<compile_context>
chip_gen: v6e
topology: v6e:2x2x1
jax: 0.10.0
libtpu: 0.0.40
codegen_flags: <defaults>
</compile_context>

<pallas_src>
import functools

import jax
import jax.numpy as jnp
from jax.experimental import pallas as pl
from jax.experimental.pallas import tpu as pltpu


def _round_up(v, m):
    return ((v + m - 1) // m) * m


# ----------------------------------------------------------------------------
# Kernel: out = [relu](x @ w + b); bf16 MXU operands, f32 accumulate + epilogue.
# ----------------------------------------------------------------------------
def _gemm_kernel(x_ref, w_ref, b_ref, o_ref, *, relu):
    z = jnp.dot(x_ref[...], w_ref[...], preferred_element_type=jnp.float32)
    z = z + b_ref[...]                       # (TM, N) + (1, N)
    if relu:
        z = jnp.maximum(z, 0.0)
    o_ref[...] = z.astype(o_ref.dtype)


def pallas_linear(x, w, b, *, relu, out_dtype, tm_single=512, tm=256):
    """x:(M,K) bf16, w:(K,N) bf16 (prepared), b:(1,N) f32 -> (M,N) out_dtype."""
    M, K = x.shape
    Kw, N = w.shape
    assert K == Kw, (K, Kw)

    if M <= tm_single:            # single grid step: block == full array, no padding
        TM, Mp = M, M
    else:                         # tile M over a "parallel" axis (v7x megacore)
        TM = tm
        Mp = _round_up(M, TM)
        if Mp != M:
            x = jnp.pad(x, ((0, Mp - M), (0, 0)))

    out = pl.pallas_call(
        functools.partial(_gemm_kernel, relu=relu),
        out_shape=jax.ShapeDtypeStruct((Mp, N), out_dtype),
        grid=(Mp // TM,),
        in_specs=[
            pl.BlockSpec((TM, K), lambda i: (i, 0)),   # activations stream over M
            pl.BlockSpec((K, N), lambda i: (0, 0)),    # weights resident in VMEM
            pl.BlockSpec((1, N), lambda i: (0, 0)),    # bias resident
        ],
        out_specs=pl.BlockSpec((TM, N), lambda i: (i, 0)),
        compiler_params=pltpu.CompilerParams(
            dimension_semantics=("parallel",)),
        cost_estimate=pl.CostEstimate(
            flops=2 * Mp * K * N,
            transcendentals=0,
            bytes_accessed=Mp * K * 2 + K * N * 2 + N * 4
            + Mp * N * jnp.dtype(out_dtype).itemsize),
    )(x, w, b)
    return out[:M] if Mp != M else out


# ----------------------------------------------------------------------------
# Fused MLP tail: conv4(as linear) -> fc1 -> ReLU -> fc2 -> adv1 -> ReLU
#                 -> adv2 -> ReLU -> adv3, all weights VMEM-resident.
# ----------------------------------------------------------------------------
def _mlp_kernel(x_ref, *refs, relus):
    o_ref = refs[-1]
    h = x_ref[...]                                    # bf16
    n = len(relus)
    for idx in range(n):
        w_ref, b_ref = refs[2 * idx], refs[2 * idx + 1]
        z = jnp.dot(h, w_ref[...], preferred_element_type=jnp.float32)
        z = z + b_ref[...]
        if relus[idx]:
            z = jnp.maximum(z, 0.0)
        h = z.astype(jnp.bfloat16) if idx + 1 < n else z
    o_ref[...] = h                                    # final layer stays f32


def pallas_mlp(x, layers, *, tm=256):
    """Fused Linear chain.  x:(M,K) bf16; layers: [(w,b,relu),...] -> (M,N_last) f32."""
    M, K = x.shape
    if M <= tm:
        TM, Mp = M, M
    else:
        TM = tm
        Mp = _round_up(M, TM)
        if Mp != M:
            x = jnp.pad(x, ((0, Mp - M), (0, 0)))

    args = [x]
    in_specs = [pl.BlockSpec((TM, K), lambda i: (i, 0))]
    flops = 0
    for w, b, _ in layers:
        kk, nn = w.shape
        args += [w, b]
        in_specs += [pl.BlockSpec((kk, nn), lambda i: (0, 0)),
                     pl.BlockSpec((1, nn), lambda i: (0, 0))]
        flops += 2 * Mp * kk * nn
    n_out = layers[-1][0].shape[1]
    relus = tuple(r for _, _, r in layers)
    bytes_accessed = sum(int(a.size) * a.dtype.itemsize for a in args) + Mp * n_out * 4

    out = pl.pallas_call(
        functools.partial(_mlp_kernel, relus=relus),
        out_shape=jax.ShapeDtypeStruct((Mp, n_out), jnp.float32),
        grid=(Mp // TM,),
        in_specs=in_specs,
        out_specs=pl.BlockSpec((TM, n_out), lambda i: (i, 0)),
        compiler_params=pltpu.CompilerParams(
            dimension_semantics=("parallel",)),
        cost_estimate=pl.CostEstimate(
            flops=flops, transcendentals=0, bytes_accessed=bytes_accessed),
    )(*args)
    return out[:M] if Mp != M else out


# ----------------------------------------------------------------------------
# Conv2d (valid padding) = NHWC im2col (XLA glue, fused) + Pallas GEMM (hot path)
# ----------------------------------------------------------------------------
def _im2col_nhwc(x, kh, kw, stride):
    """x:(B,H,W,C) -> ((B*Ho*Wo, kh*kw*C), Ho, Wo).  Column order is (ki, kj, c)."""
    B, H, W, C = x.shape
    Ho = (H - kh) // stride + 1
    Wo = (W - kw) // stride + 1
    cols = []
    for ki in range(kh):
        for kj in range(kw):
            cols.append(x[:, ki:ki + stride * Ho:stride,
                          kj:kj + stride * Wo:stride, :])    # (B,Ho,Wo,C)
    cols = jnp.stack(cols, axis=3)                           # (B,Ho,Wo,kh*kw,C)
    return cols.reshape(B * Ho * Wo, kh * kw * C), Ho, Wo


def conv2d_relu_nhwc(x, w, b, stride, k=3):
    """x:(B,H,W,C) bf16; w:(k*k*C,OC) bf16 prepared; b:(1,OC) f32 -> (B,Ho,Wo,OC) bf16."""
    cols, Ho, Wo = _im2col_nhwc(x, k, k, stride)
    out = pallas_linear(cols, w, b, relu=True, out_dtype=jnp.bfloat16)
    return out.reshape(x.shape[0], Ho, Wo, w.shape[1])


# ----------------------------------------------------------------------------
# Parameter init: GEMM-ready (pre-transposed / pre-padded / bf16) weights.
# PyTorch-default-style uniform(+-1/sqrt(fan_in)) initialization.
# ----------------------------------------------------------------------------
def _uniform(key, shape, bound):
    return jax.random.uniform(key, shape, jnp.float32, -bound, bound)


def _prep_conv(w_oihw, b):
    """PyTorch Conv2d weight (OC,IC,kh,kw) -> ((kh*kw*IC,OC) bf16, (1,OC) f32)."""
    oc, ic, kh, kw = w_oihw.shape
    wm = w_oihw.transpose(2, 3, 1, 0).reshape(kh * kw * ic, oc)
    return wm.astype(jnp.bfloat16), b.reshape(1, oc).astype(jnp.float32)


def _prep_linear(w_in_out, b, pad_to=None):
    """(in,out) weight -> bf16, optional lane padding of the out dim; bias -> (1,out) f32."""
    _, n = w_in_out.shape
    bb = b.reshape(1, n)
    if pad_to is not None and n < pad_to:
        w_in_out = jnp.pad(w_in_out, ((0, 0), (0, pad_to - n)))
        bb = jnp.pad(bb, ((0, 0), (0, pad_to - n)))
    return w_in_out.astype(jnp.bfloat16), bb.astype(jnp.float32)


def init_params(key, in_channels, num_actions):
    def conv_init(k, oc, ic, ksz):
        kw_, kb_ = jax.random.split(k)
        bound = 1.0 / (ic * ksz * ksz) ** 0.5
        return _prep_conv(_uniform(kw_, (oc, ic, ksz, ksz), bound),
                          _uniform(kb_, (oc,), bound))

    def lin_init(k, fan_in, fan_out, pad_to=None):
        kw_, kb_ = jax.random.split(k)
        bound = 1.0 / fan_in ** 0.5
        return _prep_linear(_uniform(kw_, (fan_in, fan_out), bound),
                            _uniform(kb_, (fan_out,), bound), pad_to)

    keys = jax.random.split(key, 9)
    p = {}
    p["conv1_w"], p["conv1_b"] = conv_init(keys[0], 16, in_channels, 3)
    p["conv2_w"], p["conv2_b"] = conv_init(keys[1], 64, 16, 3)
    p["conv3_w"], p["conv3_b"] = conv_init(keys[2], 128, 64, 3)
    p["conv4_w"], p["conv4_b"] = conv_init(keys[3], 256, 128, 3)
    # feature_size() for input_shape (4,48,48): conv4 output (256,1,1) -> 256
    p["fc1_w"], p["fc1_b"] = lin_init(keys[4], 256, 512)
    p["fc2_w"], p["fc2_b"] = lin_init(keys[5], 512, 256)
    p["adv1_w"], p["adv1_b"] = lin_init(keys[6], 256, 128)
    p["adv2_w"], p["adv2_b"] = lin_init(keys[7], 128, 64)
    p["adv3_w"], p["adv3_b"] = lin_init(keys[8], 64, num_actions, pad_to=128)
    return p


# ----------------------------------------------------------------------------
# Forward pass (CnnDQN default path: not fc_only, not fusioned, dueling=False)
# ----------------------------------------------------------------------------
def cnn_dqn_forward(params, x, *, input_shape, num_actions):
    # x = x.view(-1, *input_shape)  (PyTorch NCHW) -> channels-last bf16, once.
    x = x.reshape((-1,) + tuple(input_shape))
    h = x.transpose(0, 2, 3, 1).astype(jnp.bfloat16)             # (B,H,W,C)
    # self.features: Conv(s3)+ReLU, Conv(s2)+ReLU, Conv(s2)+ReLU  (conv4 fused below).
    h = conv2d_relu_nhwc(h, params["conv1_w"], params["conv1_b"], stride=3)
    h = conv2d_relu_nhwc(h, params["conv2_w"], params["conv2_b"], stride=2)
    h = conv2d_relu_nhwc(h, params["conv3_w"], params["conv3_b"], stride=2)
    # conv4 (3x3, stride 2) has a 1x1 spatial output here, so its im2col is a plain
    # flatten of the (B,3,3,128) activation -> fold conv4 into the fused FC tail.
    if h.shape[1] != 3 or h.shape[2] != 3:
        # TODO(synk): general conv4 spatial sizes need a separate conv GEMM plus an
        # NCHW-ordered flatten before the FC tail.
        raise NotImplementedError("fused tail assumes a 1x1 conv4 output")
    feats = h.reshape(h.shape[0], -1)                            # (B, 1152) bf16
    # conv4+ReLU -> self.fc (Linear,ReLU,Linear) -> self.fc_adv, one pallas_call.
    layers = [
        (params["conv4_w"], params["conv4_b"], True),
        (params["fc1_w"],  params["fc1_b"],  True),
        (params["fc2_w"],  params["fc2_b"],  False),
        (params["adv1_w"], params["adv1_b"], True),
        (params["adv2_w"], params["adv2_b"], True),
        (params["adv3_w"], params["adv3_b"], False),
    ]
    scores = pallas_mlp(feats, layers)                           # (B, 128) f32
    # dueling=False -> output = ac_scores (adv3 was lane-padded to 128; slice back).
    # TODO(synk): dueling / fc_only / fusioned (LayerNorm fusion) branches not exercised.
    return scores[:, :num_actions]


if __name__ == "__main__":
    # input_shape chosen so the conv stack is valid: 48 -> 16 -> 7 -> 3 -> 1
    input_shape = (4, 48, 48)
    num_actions = 6
    batch = 2

    key_params, key_x = jax.random.split(jax.random.PRNGKey(0))
    params = init_params(key_params, input_shape[0], num_actions)
    x = jax.random.normal(key_x, (batch,) + input_shape, jnp.float32)

    fwd = jax.jit(functools.partial(cnn_dqn_forward, input_shape=input_shape,
                                    num_actions=num_actions))
    out = fwd(params, x)
    jax.block_until_ready(out)
    assert out.shape == (batch, num_actions), out.shape
    print("KERNEL_OK")
</pallas_src>

<mosaic_0001>
module attributes {stable_mosaic.version = 11 : i64} {
  func.func @_gemm_kernel(%arg0: i32, %arg1: memref<512x36xbf16, #tpu.memory_space<vmem>>, %arg2: memref<36x16xbf16, #tpu.memory_space<vmem>>, %arg3: memref<1x16xf32, #tpu.memory_space<vmem>>, %arg4: memref<512x16xbf16, #tpu.memory_space<vmem>>) attributes {dimension_semantics = [#tpu.dimension_semantics<parallel>], iteration_bounds = array<i64: 1>, scalar_prefetch = 0 : i64, scratch_operands = 0 : i64, tpu.core_type = #tpu.core_type<tc>, window_params = [{transform_indices = @transform_0, window_bounds = array<i64: 512, 36>}, {pipeline_mode = #tpu.pipeline_mode<synchronous>, transform_indices = @transform_1, window_bounds = array<i64: 36, 16>}, {pipeline_mode = #tpu.pipeline_mode<synchronous>, transform_indices = @transform_2, window_bounds = array<i64: 1, 16>}, {transform_indices = @transform_3, window_bounds = array<i64: 512, 16>}]} {
    %c0 = arith.constant 0 : index
    %c0_0 = arith.constant 0 : index
    %0 = vector.load %arg1[%c0, %c0_0] : memref<512x36xbf16, #tpu.memory_space<vmem>>, vector<512x36xbf16>
    %c0_1 = arith.constant 0 : index
    %c0_2 = arith.constant 0 : index
    %1 = vector.load %arg2[%c0_1, %c0_2] : memref<36x16xbf16, #tpu.memory_space<vmem>>, vector<36x16xbf16>
    %cst = arith.constant dense<0.000000e+00> : vector<512x16xf32>
    %2 = tpu.matmul %0, %1, %cst {dimension_numbers = #tpu.dot_dimension_numbers<[1], [0], [0], [1], [0, 0, 1, 1], [], []>} : vector<512x36xbf16>, vector<36x16xbf16>, vector<512x16xf32> -> vector<512x16xf32>
    %c0_3 = arith.constant 0 : index
    %c0_4 = arith.constant 0 : index
    %3 = vector.load %arg3[%c0_3, %c0_4] : memref<1x16xf32, #tpu.memory_space<vmem>>, vector<1x16xf32>
    %4 = vector.broadcast %3 : vector<1x16xf32> to vector<512x16xf32>
    %5 = arith.addf %2, %4 : vector<512x16xf32>
    %cst_5 = arith.constant 0.000000e+00 : f32
    %6 = vector.broadcast %cst_5 : f32 to vector<512x16xf32>
    %7 = arith.maximumf %5, %6 : vector<512x16xf32>
    %8 = arith.truncf %7 : vector<512x16xf32> to vector<512x16xbf16>
    %c0_6 = arith.constant 0 : index
    %c0_7 = arith.constant 0 : index
    %9 = vector.load %arg4[%c0_6, %c0_7] : memref<512x16xbf16, #tpu.memory_space<vmem>>, vector<512x16xbf16>
    tpu.vector_store %arg4[%c0_6, %c0_7], %8 {strides = array<i32>} : memref<512x16xbf16, #tpu.memory_space<vmem>>, vector<512x16xbf16>,
    return
  }
  func.func @transform_0(%arg0: i32) -> (i32, i32) {
    %c0_i32 = arith.constant 0 : i32
    %c0_i32_0 = arith.constant 0 : i32
    return %arg0, %c0_i32 : i32, i32
  }
  func.func @transform_1(%arg0: i32) -> (i32, i32) {
    %c0_i32 = arith.constant 0 : i32
    %c0_i32_0 = arith.constant 0 : i32
    %c0_i32_1 = arith.constant 0 : i32
    return %c0_i32, %c0_i32_0 : i32, i32
  }
  func.func @transform_2(%arg0: i32) -> (i32, i32) {
    %c0_i32 = arith.constant 0 : i32
    %c0_i32_0 = arith.constant 0 : i32
    %c0_i32_1 = arith.constant 0 : i32
    return %c0_i32, %c0_i32_0 : i32, i32
  }
  func.func @transform_3(%arg0: i32) -> (i32, i32) {
    %c0_i32 = arith.constant 0 : i32
    %c0_i32_0 = arith.constant 0 : i32
    return %arg0, %c0_i32 : i32, i32
  }
}

module attributes {stable_mosaic.version = 11 : i64} {
  func.func @_gemm_kernel(%arg0: i32, %arg1: memref<98x144xbf16, #tpu.memory_space<vmem>>, %arg2: memref<144x64xbf16, #tpu.memory_space<vmem>>, %arg3: memref<1x64xf32, #tpu.memory_space<vmem>>, %arg4: memref<98x64xbf16, #tpu.memory_space<vmem>>) attributes {dimension_semantics = [#tpu.dimension_semantics<parallel>], iteration_bounds = array<i64: 1>, scalar_prefetch = 0 : i64, scratch_operands = 0 : i64, tpu.core_type = #tpu.core_type<tc>, window_params = [{transform_indices = @transform_0, window_bounds = array<i64: 98, 144>}, {pipeline_mode = #tpu.pipeline_mode<synchronous>, transform_indices = @transform_1, window_bounds = array<i64: 144, 64>}, {pipeline_mode = #tpu.pipeline_mode<synchronous>, transform_indices = @transform_2, window_bounds = array<i64: 1, 64>}, {transform_indices = @transform_3, window_bounds = array<i64: 98, 64>}]} {
    %c0 = arith.constant 0 : index
    %c0_0 = arith.constant 0 : index
    %0 = vector.load %arg1[%c0, %c0_0] : memref<98x144xbf16, #tpu.memory_space<vmem>>, vector<98x144xbf16>
    %c0_1 = arith.constant 0 : index
    %c0_2 = arith.constant 0 : index
    %1 = vector.load %arg2[%c0_1, %c0_2] : memref<144x64xbf16, #tpu.memory_space<vmem>>, vector<144x64xbf16>
    %cst = arith.constant dense<0.000000e+00> : vector<98x64xf32>
    %2 = tpu.matmul %0, %1, %cst {dimension_numbers = #tpu.dot_dimension_numbers<[1], [0], [0], [1], [0, 0, 1, 1], [], []>} : vector<98x144xbf16>, vector<144x64xbf16>, vector<98x64xf32> -> vector<98x64xf32>
    %c0_3 = arith.constant 0 : index
    %c0_4 = arith.constant 0 : index
    %3 = vector.load %arg3[%c0_3, %c0_4] : memref<1x64xf32, #tpu.memory_space<vmem>>, vector<1x64xf32>
    %4 = vector.broadcast %3 : vector<1x64xf32> to vector<98x64xf32>
    %5 = arith.addf %2, %4 : vector<98x64xf32>
    %cst_5 = arith.constant 0.000000e+00 : f32
    %6 = vector.broadcast %cst_5 : f32 to vector<98x64xf32>
    %7 = arith.maximumf %5, %6 : vector<98x64xf32>
    %8 = arith.truncf %7 : vector<98x64xf32> to vector<98x64xbf16>
    %c0_6 = arith.constant 0 : index
    %c0_7 = arith.constant 0 : index
    %9 = vector.load %arg4[%c0_6, %c0_7] : memref<98x64xbf16, #tpu.memory_space<vmem>>, vector<98x64xbf16>
    tpu.vector_store %arg4[%c0_6, %c0_7], %8 {strides = array<i32>} : memref<98x64xbf16, #tpu.memory_space<vmem>>, vector<98x64xbf16>,
    return
  }
  func.func @transform_0(%arg0: i32) -> (i32, i32) {
    %c0_i32 = arith.constant 0 : i32
    %c0_i32_0 = arith.constant 0 : i32
    return %arg0, %c0_i32 : i32, i32
  }
  func.func @transform_1(%arg0: i32) -> (i32, i32) {
    %c0_i32 = arith.constant 0 : i32
    %c0_i32_0 = arith.constant 0 : i32
    %c0_i32_1 = arith.constant 0 : i32
    return %c0_i32, %c0_i32_0 : i32, i32
  }
  func.func @transform_2(%arg0: i32) -> (i32, i32) {
    %c0_i32 = arith.constant 0 : i32
    %c0_i32_0 = arith.constant 0 : i32
    %c0_i32_1 = arith.constant 0 : i32
    return %c0_i32, %c0_i32_0 : i32, i32
  }
  func.func @transform_3(%arg0: i32) -> (i32, i32) {
    %c0_i32 = arith.constant 0 : i32
    %c0_i32_0 = arith.constant 0 : i32
    return %arg0, %c0_i32 : i32, i32
  }
}

module attributes {stable_mosaic.version = 11 : i64} {
  func.func @_gemm_kernel(%arg0: i32, %arg1: memref<18x576xbf16, #tpu.memory_space<vmem>>, %arg2: memref<576x128xbf16, #tpu.memory_space<vmem>>, %arg3: memref<1x128xf32, #tpu.memory_space<vmem>>, %arg4: memref<18x128xbf16, #tpu.memory_space<vmem>>) attributes {dimension_semantics = [#tpu.dimension_semantics<parallel>], iteration_bounds = array<i64: 1>, scalar_prefetch = 0 : i64, scratch_operands = 0 : i64, tpu.core_type = #tpu.core_type<tc>, window_params = [{transform_indices = @transform_0, window_bounds = array<i64: 18, 576>}, {pipeline_mode = #tpu.pipeline_mode<synchronous>, transform_indices = @transform_1, window_bounds = array<i64: 576, 128>}, {pipeline_mode = #tpu.pipeline_mode<synchronous>, transform_indices = @transform_2, window_bounds = array<i64: 1, 128>}, {transform_indices = @transform_3, window_bounds = array<i64: 18, 128>}]} {
    %c0 = arith.constant 0 : index
    %c0_0 = arith.constant 0 : index
    %0 = vector.load %arg1[%c0, %c0_0] : memref<18x576xbf16, #tpu.memory_space<vmem>>, vector<18x576xbf16>
    %c0_1 = arith.constant 0 : index
    %c0_2 = arith.constant 0 : index
    %1 = vector.load %arg2[%c0_1, %c0_2] : memref<576x128xbf16, #tpu.memory_space<vmem>>, vector<576x128xbf16>
    %cst = arith.constant dense<0.000000e+00> : vector<18x128xf32>
    %2 = tpu.matmul %0, %1, %cst {dimension_numbers = #tpu.dot_dimension_numbers<[1], [0], [0], [1], [0, 0, 1, 1], [], []>} : vector<18x576xbf16>, vector<576x128xbf16>, vector<18x128xf32> -> vector<18x128xf32>
    %c0_3 = arith.constant 0 : index
    %c0_4 = arith.constant 0 : index
    %3 = vector.load %arg3[%c0_3, %c0_4] : memref<1x128xf32, #tpu.memory_space<vmem>>, vector<1x128xf32>
    %4 = vector.broadcast %3 : vector<1x128xf32> to vector<18x128xf32>
    %5 = arith.addf %2, %4 : vector<18x128xf32>
    %cst_5 = arith.constant 0.000000e+00 : f32
    %6 = vector.broadcast %cst_5 : f32 to vector<18x128xf32>
    %7 = arith.maximumf %5, %6 : vector<18x128xf32>
    %8 = arith.truncf %7 : vector<18x128xf32> to vector<18x128xbf16>
    %c0_6 = arith.constant 0 : index
    %c0_7 = arith.constant 0 : index
    %9 = vector.load %arg4[%c0_6, %c0_7] : memref<18x128xbf16, #tpu.memory_space<vmem>>, vector<18x128xbf16>
    tpu.vector_store %arg4[%c0_6, %c0_7], %8 {strides = array<i32>} : memref<18x128xbf16, #tpu.memory_space<vmem>>, vector<18x128xbf16>,
    return
  }
  func.func @transform_0(%arg0: i32) -> (i32, i32) {
    %c0_i32 = arith.constant 0 : i32
    %c0_i32_0 = arith.constant 0 : i32
    return %arg0, %c0_i32 : i32, i32
  }
  func.func @transform_1(%arg0: i32) -> (i32, i32) {
    %c0_i32 = arith.constant 0 : i32
    %c0_i32_0 = arith.constant 0 : i32
    %c0_i32_1 = arith.constant 0 : i32
    return %c0_i32, %c0_i32_0 : i32, i32
  }
  func.func @transform_2(%arg0: i32) -> (i32, i32) {
    %c0_i32 = arith.constant 0 : i32
    %c0_i32_0 = arith.constant 0 : i32
    %c0_i32_1 = arith.constant 0 : i32
    return %c0_i32, %c0_i32_0 : i32, i32
  }
  func.func @transform_3(%arg0: i32) -> (i32, i32) {
    %c0_i32 = arith.constant 0 : i32
    %c0_i32_0 = arith.constant 0 : i32
    return %arg0, %c0_i32 : i32, i32
  }
}

module attributes {stable_mosaic.version = 11 : i64} {
  func.func @_mlp_kernel(%arg0: i32, %arg1: memref<2x1152xbf16, #tpu.memory_space<vmem>>, %arg2: memref<1152x256xbf16, #tpu.memory_space<vmem>>, %arg3: memref<1x256xf32, #tpu.memory_space<vmem>>, %arg4: memref<256x512xbf16, #tpu.memory_space<vmem>>, %arg5: memref<1x512xf32, #tpu.memory_space<vmem>>, %arg6: memref<512x256xbf16, #tpu.memory_space<vmem>>, %arg7: memref<1x256xf32, #tpu.memory_space<vmem>>, %arg8: memref<256x128xbf16, #tpu.memory_space<vmem>>, %arg9: memref<1x128xf32, #tpu.memory_space<vmem>>, %arg10: memref<128x64xbf16, #tpu.memory_space<vmem>>, %arg11: memref<1x64xf32, #tpu.memory_space<vmem>>, %arg12: memref<64x128xbf16, #tpu.memory_space<vmem>>, %arg13: memref<1x128xf32, #tpu.memory_space<vmem>>, %arg14: memref<2x128xf32, #tpu.memory_space<vmem>>) attributes {dimension_semantics = [#tpu.dimension_semantics<parallel>], iteration_bounds = array<i64: 1>, scalar_prefetch = 0 : i64, scratch_operands = 0 : i64, tpu.core_type = #tpu.core_type<tc>, window_params = [{transform_indices = @transform_0, window_bounds = array<i64: 2, 1152>}, {pipeline_mode = #tpu.pipeline_mode<synchronous>, transform_indices = @transform_1, window_bounds = array<i64: 1152, 256>}, {pipeline_mode = #tpu.pipeline_mode<synchronous>, transform_indices = @transform_2, window_bounds = array<i64: 1, 256>}, {pipeline_mode = #tpu.pipeline_mode<synchronous>, transform_indices = @transform_3, window_bounds = array<i64: 256, 512>}, {pipeline_mode = #tpu.pipeline_mode<synchronous>, transform_indices = @transform_4, window_bounds = array<i64: 1, 512>}, {pipeline_mode = #tpu.pipeline_mode<synchronous>, transform_indices = @transform_5, window_bounds = array<i64: 512, 256>}, {pipeline_mode = #tpu.pipeline_mode<synchronous>, transform_indices = @transform_6, window_bounds = array<i64: 1, 256>}, {pipeline_mode = #tpu.pipeline_mode<synchronous>, transform_indices = @transform_7, window_bounds = array<i64: 256, 128>}, {pipeline_mode = #tpu.pipeline_mode<synchronous>, transform_indices = @transform_8, window_bounds = array<i64: 1, 128>}, {pipeline_mode = #tpu.pipeline_mode<synchronous>, transform_indices = @transform_9, window_bounds = array<i64: 128, 64>}, {pipeline_mode = #tpu.pipeline_mode<synchronous>, transform_indices = @transform_10, window_bounds = array<i64: 1, 64>}, {pipeline_mode = #tpu.pipeline_mode<synchronous>, transform_indices = @transform_11, window_bounds = array<i64: 64, 128>}, {pipeline_mode = #tpu.pipeline_mode<synchronous>, transform_indices = @transform_12, window_bounds = array<i64: 1, 128>}, {transform_indices = @transform_13, window_bounds = array<i64: 2, 128>}]} {
    %c0 = arith.constant 0 : index
    %c0_0 = arith.constant 0 : index
    %0 = vector.load %arg1[%c0, %c0_0] : memref<2x1152xbf16, #tpu.memory_space<vmem>>, vector<2x1152xbf16>
    %c0_1 = arith.constant 0 : index
    %c0_2 = arith.constant 0 : index
    %1 = vector.load %arg2[%c0_1, %c0_2] : memref<1152x256xbf16, #tpu.memory_space<vmem>>, vector<1152x256xbf16>
    %cst = arith.constant dense<0.000000e+00> : vector<2x256xf32>
    %2 = tpu.matmul %0, %1, %cst {dimension_numbers = #tpu.dot_dimension_numbers<[1], [0], [0], [1], [0, 0, 1, 1], [], []>} : vector<2x1152xbf16>, vector<1152x256xbf16>, vector<2x256xf32> -> vector<2x256xf32>
    %c0_3 = arith.constant 0 : index
    %c0_4 = arith.constant 0 : index
    %3 = vector.load %arg3[%c0_3, %c0_4] : memref<1x256xf32, #tpu.memory_space<vmem>>, vector<1x256xf32>
    %4 = vector.broadcast %3 : vector<1x256xf32> to vector<2x256xf32>
    %5 = arith.addf %2, %4 : vector<2x256xf32>
    %cst_5 = arith.constant 0.000000e+00 : f32
    %6 = vector.broadcast %cst_5 : f32 to vector<2x256xf32>
    %7 = arith.maximumf %5, %6 : vector<2x256xf32>
    %8 = arith.truncf %7 : vector<2x256xf32> to vector<2x256xbf16>
    %c0_6 = arith.constant 0 : index
    %c0_7 = arith.constant 0 : index
    %9 = vector.load %arg4[%c0_6, %c0_7] : memref<256x512xbf16, #tpu.memory_space<vmem>>, vector<256x512xbf16>
    %cst_8 = arith.constant dense<0.000000e+00> : vector<2x512xf32>
    %10 = tpu.matmul %8, %9, %cst_8 {dimension_numbers = #tpu.dot_dimension_numbers<[1], [0], [0], [1], [0, 0, 1, 1], [], []>} : vector<2x256xbf16>, vector<256x512xbf16>, vector<2x512xf32> -> vector<2x512xf32>
    %c0_9 = arith.constant 0 : index
    %c0_10 = arith.constant 0 : index
    %11 = vector.load %arg5[%c0_9, %c0_10] : memref<1x512xf32, #tpu.memory_space<vmem>>, vector<1x512xf32>
    %12 = vector.broadcast %11 : vector<1x512xf32> to vector<2x512xf32>
    %13 = arith.addf %10, %12 : vector<2x512xf32>
    %cst_11 = arith.constant 0.000000e+00 : f32
    %14 = vector.broadcast %cst_11 : f32 to vector<2x512xf32>
    %15 = arith.maximumf %13, %14 : vector<2x512xf32>
    %16 = arith.truncf %15 : vector<2x512xf32> to vector<2x512xbf16>
    %c0_12 = arith.constant 0 : index
    %c0_13 = arith.constant 0 : index
    %17 = vector.load %arg6[%c0_12, %c0_13] : memref<512x256xbf16, #tpu.memory_space<vmem>>, vector<512x256xbf16>
    %cst_14 = arith.constant dense<0.000000e+00> : vector<2x256xf32>
    %18 = tpu.matmul %16, %17, %cst_14 {dimension_numbers = #tpu.dot_dimension_numbers<[1], [0], [0], [1], [0, 0, 1, 1], [], []>} : vector<2x512xbf16>, vector<512x256xbf16>, vector<2x256xf32> -> vector<2x256xf32>
    %c0_15 = arith.constant 0 : index
    %c0_16 = arith.constant 0 : index
    %19 = vector.load %arg7[%c0_15, %c0_16] : memref<1x256xf32, #tpu.memory_space<vmem>>, vector<1x256xf32>
    %20 = vector.broadcast %19 : vector<1x256xf32> to vector<2x256xf32>
    %21 = arith.addf %18, %20 : vector<2x256xf32>
    %22 = arith.truncf %21 : vector<2x256xf32> to vector<2x256xbf16>
    %c0_17 = arith.constant 0 : index
    %c0_18 = arith.constant 0 : index
    %23 = vector.load %arg8[%c0_17, %c0_18] : memref<256x128xbf16, #tpu.memory_space<vmem>>, vector<256x128xbf16>
    %cst_19 = arith.constant dense<0.000000e+00> : vector<2x128xf32>
    %24 = tpu.matmul %22, %23, %cst_19 {dimension_numbers = #tpu.dot_dimension_numbers<[1], [0], [0], [1], [0, 0, 1, 1], [], []>} : vector<2x256xbf16>, vector<256x128xbf16>, vector<2x128xf32> -> vector<2x128xf32>
    %c0_20 = arith.constant 0 : index
    %c0_21 = arith.constant 0 : index
    %25 = vector.load %arg9[%c0_20, %c0_21] : memref<1x128xf32, #tpu.memory_space<vmem>>, vector<1x128xf32>
    %26 = vector.broadcast %25 : vector<1x128xf32> to vector<2x128xf32>
    %27 = arith.addf %24, %26 : vector<2x128xf32>
    %cst_22 = arith.constant 0.000000e+00 : f32
    %28 = vector.broadcast %cst_22 : f32 to vector<2x128xf32>
    %29 = arith.maximumf %27, %28 : vector<2x128xf32>
    %30 = arith.truncf %29 : vector<2x128xf32> to vector<2x128xbf16>
    %c0_23 = arith.constant 0 : index
    %c0_24 = arith.constant 0 : index
    %31 = vector.load %arg10[%c0_23, %c0_24] : memref<128x64xbf16, #tpu.memory_space<vmem>>, vector<128x64xbf16>
    %cst_25 = arith.constant dense<0.000000e+00> : vector<2x64xf32>
    %32 = tpu.matmul %30, %31, %cst_25 {dimension_numbers = #tpu.dot_dimension_numbers<[1], [0], [0], [1], [0, 0, 1, 1], [], []>} : vector<2x128xbf16>, vector<128x64xbf16>, vector<2x64xf32> -> vector<2x64xf32>
    %c0_26 = arith.constant 0 : index
    %c0_27 = arith.constant 0 : index
    %33 = vector.load %arg11[%c0_26, %c0_27] : memref<1x64xf32, #tpu.memory_space<vmem>>, vector<1x64xf32>
    %34 = vector.broadcast %33 : vector<1x64xf32> to vector<2x64xf32>
    %35 = arith.addf %32, %34 : vector<2x64xf32>
    %cst_28 = arith.constant 0.000000e+00 : f32
    %36 = vector.broadcast %cst_28 : f32 to vector<2x64xf32>
    %37 = arith.maximumf %35, %36 : vector<2x64xf32>
    %38 = arith.truncf %37 : vector<2x64xf32> to vector<2x64xbf16>
    %c0_29 = arith.constant 0 : index
    %c0_30 = arith.constant 0 : index
    %39 = vector.load %arg12[%c0_29, %c0_30] : memref<64x128xbf16, #tpu.memory_space<vmem>>, vector<64x128xbf16>
    %cst_31 = arith.constant dense<0.000000e+00> : vector<2x128xf32>
    %40 = tpu.matmul %38, %39, %cst_31 {dimension_numbers = #tpu.dot_dimension_numbers<[1], [0], [0], [1], [0, 0, 1, 1], [], []>} : vector<2x64xbf16>, vector<64x128xbf16>, vector<2x128xf32> -> vector<2x128xf32>
    %c0_32 = arith.constant 0 : index
    %c0_33 = arith.constant 0 : index
    %41 = vector.load %arg13[%c0_32, %c0_33] : memref<1x128xf32, #tpu.memory_space<vmem>>, vector<1x128xf32>
    %42 = vector.broadcast %41 : vector<1x128xf32> to vector<2x128xf32>
    %43 = arith.addf %40, %42 : vector<2x128xf32>
    %c0_34 = arith.constant 0 : index
    %c0_35 = arith.constant 0 : index
    %44 = vector.load %arg14[%c0_34, %c0_35] : memref<2x128xf32, #tpu.memory_space<vmem>>, vector<2x128xf32>
    tpu.vector_store %arg14[%c0_34, %c0_35], %43 {strides = array<i32>} : memref<2x128xf32, #tpu.memory_space<vmem>>, vector<2x128xf32>,
    return
  }
  func.func @transform_0(%arg0: i32) -> (i32, i32) {
    %c0_i32 = arith.constant 0 : i32
    %c0_i32_0 = arith.constant 0 : i32
    return %arg0, %c0_i32 : i32, i32
  }
  func.func @transform_1(%arg0: i32) -> (i32, i32) {
    %c0_i32 = arith.constant 0 : i32
    %c0_i32_0 = arith.constant 0 : i32
    %c0_i32_1 = arith.constant 0 : i32
    return %c0_i32, %c0_i32_0 : i32, i32
  }
  func.func @transform_2(%arg0: i32) -> (i32, i32) {
    %c0_i32 = arith.constant 0 : i32
    %c0_i32_0 = arith.constant 0 : i32
    %c0_i32_1 = arith.constant 0 : i32
    return %c0_i32, %c0_i32_0 : i32, i32
  }
  func.func @transform_3(%arg0: i32) -> (i32, i32) {
    %c0_i32 = arith.constant 0 : i32
    %c0_i32_0 = arith.constant 0 : i32
    %c0_i32_1 = arith.constant 0 : i32
    return %c0_i32, %c0_i32_0 : i32, i32
  }
  func.func @transform_4(%arg0: i32) -> (i32, i32) {
    %c0_i32 = arith.constant 0 : i32
    %c0_i32_0 = arith.constant 0 : i32
    %c0_i32_1 = arith.constant 0 : i32
    return %c0_i32, %c0_i32_0 : i32, i32
  }
  func.func @transform_5(%arg0: i32) -> (i32, i32) {
    %c0_i32 = arith.constant 0 : i32
    %c0_i32_0 = arith.constant 0 : i32
    %c0_i32_1 = arith.constant 0 : i32
    return %c0_i32, %c0_i32_0 : i32, i32
  }
  func.func @transform_6(%arg0: i32) -> (i32, i32) {
    %c0_i32 = arith.constant 0 : i32
    %c0_i32_0 = arith.constant 0 : i32
    %c0_i32_1 = arith.constant 0 : i32
    return %c0_i32, %c0_i32_0 : i32, i32
  }
  func.func @transform_7(%arg0: i32) -> (i32, i32) {
    %c0_i32 = arith.constant 0 : i32
    %c0_i32_0 = arith.constant 0 : i32
    %c0_i32_1 = arith.constant 0 : i32
    return %c0_i32, %c0_i32_0 : i32, i32
  }
  func.func @transform_8(%arg0: i32) -> (i32, i32) {
    %c0_i32 = arith.constant 0 : i32
    %c0_i32_0 = arith.constant 0 : i32
    %c0_i32_1 = arith.constant 0 : i32
    return %c0_i32, %c0_i32_0 : i32, i32
  }
  func.func @transform_9(%arg0: i32) -> (i32, i32) {
    %c0_i32 = arith.constant 0 : i32
    %c0_i32_0 = arith.constant 0 : i32
    %c0_i32_1 = arith.constant 0 : i32
    return %c0_i32, %c0_i32_0 : i32, i32
  }
  func.func @transform_10(%arg0: i32) -> (i32, i32) {
    %c0_i32 = arith.constant 0 : i32
    %c0_i32_0 = arith.constant 0 : i32
    %c0_i32_1 = arith.constant 0 : i32
    return %c0_i32, %c0_i32_0 : i32, i32
  }
  func.func @transform_11(%arg0: i32) -> (i32, i32) {
    %c0_i32 = arith.constant 0 : i32
    %c0_i32_0 = arith.constant 0 : i32
    %c0_i32_1 = arith.constant 0 : i32
    return %c0_i32, %c0_i32_0 : i32, i32
  }
  func.func @transform_12(%arg0: i32) -> (i32, i32) {
    %c0_i32 = arith.constant 0 : i32
    %c0_i32_0 = arith.constant 0 : i32
    %c0_i32_1 = arith.constant 0 : i32
    return %c0_i32, %c0_i32_0 : i32, i32
  }
  func.func @transform_13(%arg0: i32) -> (i32, i32) {
    %c0_i32 = arith.constant 0 : i32
    %c0_i32_0 = arith.constant 0 : i32
    return %arg0, %c0_i32 : i32, i32
  }
}

</mosaic_0001>

<bundles_post_ra>
// kernel: cnn_dqn_forward.4
= control target key start
LH: loop header
LB: loop body
LE: loop exit
PB: predicated region body
PF: predicated region fallthrough
CT: control target
= control target key end

     0   :  { %vm363_vm0 = vcmask 1041408   ;;  %vm266_vm1 = vcmask 293888   ;;  %vm976_vm2 = vcmask 125952   ;;  %s1871_s1 = inlined_call_operand.vmem [shape: bf16[36,16], index: 1, kind: input, shape index: {}]   ;;  %s1872_s0 = inlined_call_operand.vmem [shape: bf16[512,36], index: 0, kind: input, shape index: {}]   ;;  %s1873_s2 = inlined_call_operand.vmem [shape: f32[1,16], index: 2, kind: input, shape index: {}]   ;;  %s1874_s3 = inlined_call_operand.vmem [shape: bf16[512,16], index: 3, kind: output, shape index: {}]  }
   0x1   :  { %v1354_v0 = vld [vmem:[%s1871_s1 + $0x10] ss:$0 sps:$4 sm:$0x33]   ;;  %v1355_v1 = vld [vmem:[%s1871_s1 + $0x8] sm:$0xff]   ;;  %v1356_v3 = vld [vmem:[%s1871_s1] sm:$0xff]  }
   0x2   :  { %1352 = vmatprep.subr.msk.bf16.mxu0 %vm363_vm0, %v1354_v0  ;;  %1353 = vmatprep.subr.msk.bf16.mxu1 %vm363_vm0, %v1354_v0  ;;  %v365_v2 = vsel %vm363_vm0, %v1354_v0, 0  ;;  %v1357_v4 = vld [vmem:[%s1872_s0] sm:$0xff]   ;;  %v1359_v6 = vld [vmem:[%s1872_s0 + $0x8] sm:$0xff]   ;;  %v1361_v8 = vld [vmem:[%s1872_s0 + $0x10] sm:$0xff]  }
   0x3   :  { %1277 = vmatpush3.bf16.msra.mxu0 %v365_v2  ;;  %1349 = vmatpush3.bf16.msra.mxu1 %v365_v2  ;;  %v1358_v5 = vld [vmem:[%s1872_s0 + $0x80] sm:$0xff]   ;;  %v1360_v7 = vld [vmem:[%s1872_s0 + $0x88] sm:$0xff]   ;;  %v1362_v9 = vld [vmem:[%s1872_s0 + $0x90] sm:$0xff]  }
   0x4   :  { %1278 = vmatprep.subr.bf16.mxu0 %v1355_v1  ;;  %1347 = vmatprep.subr.bf16.mxu1 %v1355_v1  ;;  %v1363_v10 = vld [vmem:[%s1872_s0 + $0x18] sm:$0xff]   ;;  %v1365_v12 = vld [vmem:[%s1872_s0 + $0x20] sm:$0xff]   ;;  %v1367_v14 = vld [vmem:[%s1872_s0 + $0x28] sm:$0xff]  }
   0x5   :  { %1282 = vmatprep.mubr.msk.bf16.mxu0 %vm266_vm1, %v1357_v4  ;;  %1314 = vmatprep.mubr.msk.bf16.mxu1 %vm266_vm1, %v1358_v5  ;;  %v1364_v11 = vld [vmem:[%s1872_s0 + $0x98] sm:$0xff]   ;;  %v1366_v13 = vld [vmem:[%s1872_s0 + $0xa0] sm:$0xff]   ;;  %v1368_v15 = vld [vmem:[%s1872_s0 + $0xa8] sm:$0xff]  }
   0x6   :  { %v1369_v16 = vld [vmem:[%s1872_s0 + $0x30] sm:$0xff]   ;;  %v1371_v18 = vld [vmem:[%s1872_s0 + $0x38] sm:$0xff]   ;;  %v1373_v20 = vld [vmem:[%s1872_s0 + $0x40] sm:$0xff]  }
   0x7   :  { %1279 = vmatpush3.bf16.msra.mxu0 %v1355_v1  ;;  %1350 = vmatpush3.bf16.msra.mxu1 %v1355_v1  ;;  %v1370_v17 = vld [vmem:[%s1872_s0 + $0xb0] sm:$0xff]   ;;  %v1372_v19 = vld [vmem:[%s1872_s0 + $0xb8] sm:$0xff]   ;;  %v1374_v21 = vld [vmem:[%s1872_s0 + $0xc0] sm:$0xff]  }
   0x8   :  { %1280 = vmatprep.subr.bf16.mxu0 %v1356_v3  ;;  %1348 = vmatprep.subr.bf16.mxu1 %v1356_v3  ;;  %v1375_v22 = vld [vmem:[%s1872_s0 + $0x48] sm:$0xff]   ;;  %v1377_v24 = vld [vmem:[%s1872_s0 + $0x50] sm:$0xff]   ;;  %v1379_v26 = vld [vmem:[%s1872_s0 + $0x58] sm:$0xff]  }
   0x9   :  { %v1376_v23 = vld [vmem:[%s1872_s0 + $0xc8] sm:$0xff]   ;;  %v1378_v25 = vld [vmem:[%s1872_s0 + $0xd0] sm:$0xff]   ;;  %v1380_v27 = vld [vmem:[%s1872_s0 + $0xd8] sm:$0xff]  }
   0xa   :  { %v1381_v28 = vld [vmem:[%s1872_s0 + $0x60] sm:$0xff]   ;;  %v1383_v30 = vld [vmem:[%s1872_s0 + $0x68] sm:$0xff]   ;;  %v1385_v32 = vld [vmem:[%s1872_s0 + $0x70] sm:$0xff]  }
   0xb   :  { %1281 = vmatpush3.bf16.msra.mxu0 %v1356_v3  ;;  %1351 = vmatpush3.bf16.msra.mxu1 %v1356_v3  ;;  %v1382_v29 = vld [vmem:[%s1872_s0 + $0xe0] sm:$0xff]   ;;  %v1384_v31 = vld [vmem:[%s1872_s0 + $0xe8] sm:$0xff]   ;;  %v1386_v33 = vld [vmem:[%s1872_s0 + $0xf0] sm:$0xff]  }
   0xc   :  { %v1387_v34 = vld [vmem:[%s1872_s0 + $0x78] sm:$0xff]   ;;  %v1549_v36 = vld [vmem:[%s1873_s2] ss:$0 sm:$0xff] }
   0xd   :  { %v1388_v35 = vld [vmem:[%s1872_s0 + $0xf8] sm:$0xff]  }
   0xe   :  { %1283 = vmatmul.mubr.msk.bf16.vlgmr.msra.gmra.mxu0 %vm266_vm1, %v1359_v6  ;;  %1315 = vmatmul.mubr.msk.bf16.vlgmr.msra.gmra.mxu1 %vm266_vm1, %v1360_v7 }
   0xf   :  { %1286 = vmatprep.mubr.msk.bf16.mxu0 %vm266_vm1, %v1361_v8  ;;  %1318 = vmatprep.mubr.msk.bf16.mxu1 %vm266_vm1, %v1362_v9 }
  0x16   :  { %1287 = vmatmul.mubr.msk.bf16.gmra.mxu0 %vm266_vm1, %v1363_v10  ;;  %1319 = vmatmul.mubr.msk.bf16.gmra.mxu1 %vm266_vm1, %v1364_v11 }
  0x17   :  { %1290 = vmatprep.mubr.msk.bf16.mxu0 %vm266_vm1, %v1365_v12  ;;  %1322 = vmatprep.mubr.msk.bf16.mxu1 %vm266_vm1, %v1366_v13 }
  0x1e   :  { %1291 = vmatmul.mubr.msk.bf16.gmra.mxu0 %vm266_vm1, %v1367_v14  ;;  %1323 = vmatmul.mubr.msk.bf16.gmra.mxu1 %vm266_vm1, %v1368_v15 }
  0x1f   :  { %1294 = vmatprep.mubr.msk.bf16.mxu0 %vm266_vm1, %v1369_v16  ;;  %1326 = vmatprep.mubr.msk.bf16.mxu1 %vm266_vm1, %v1370_v17 }
  0x26   :  { %1295 = vmatmul.mubr.msk.bf16.gmra.mxu0 %vm266_vm1, %v1371_v18  ;;  %1327 = vmatmul.mubr.msk.bf16.gmra.mxu1 %vm266_vm1, %v1372_v19 }
  0x27   :  { %1298 = vmatprep.mubr.msk.bf16.mxu0 %vm266_vm1, %v1373_v20  ;;  %1330 = vmatprep.mubr.msk.bf16.mxu1 %vm266_vm1, %v1374_v21 }
  0x2e   :  { %1299 = vmatmul.mubr.msk.bf16.gmra.mxu0 %vm266_vm1, %v1375_v22  ;;  %1331 = vmatmul.mubr.msk.bf16.gmra.mxu1 %vm266_vm1, %v1376_v23 }
  0x2f   :  { %1302 = vmatprep.mubr.msk.bf16.mxu0 %vm266_vm1, %v1377_v24  ;;  %1334 = vmatprep.mubr.msk.bf16.mxu1 %vm266_vm1, %v1378_v25 }
  0x36   :  { %1303 = vmatmul.mubr.msk.bf16.gmra.mxu0 %vm266_vm1, %v1379_v26  ;;  %1335 = vmatmul.mubr.msk.bf16.gmra.mxu1 %vm266_vm1, %v1380_v27 }
  0x37   :  { %1306 = vmatprep.mubr.msk.bf16.mxu0 %vm266_vm1, %v1381_v28  ;;  %1338 = vmatprep.mubr.msk.bf16.mxu1 %vm266_vm1, %v1382_v29 }
  0x3e   :  { %1307 = vmatmul.mubr.msk.bf16.gmra.mxu0 %vm266_vm1, %v1383_v30  ;;  %1339 = vmatmul.mubr.msk.bf16.gmra.mxu1 %vm266_vm1, %v1384_v31 }
  0x3f   :  { %1310 = vmatprep.mubr.msk.bf16.mxu0 %vm266_vm1, %v1385_v32  ;;  %1342 = vmatprep.mubr.msk.bf16.mxu1 %vm266_vm1, %v1386_v33 }
  0x46   :  { %1311 = vmatmul.mubr.msk.bf16.gmra.mxu0 %vm266_vm1, %v1387_v34  ;;  %1343 = vmatmul.mubr.msk.bf16.gmra.mxu1 %vm266_vm1, %v1388_v35 }
  0xce   :  { %v1284_v37 = vpop.f32.mrf.mxu0  ;;  %v1316_v38 = vpop.f32.mrf.mxu1 }
  0xcf   :  { %v410_v39 = vadd.f32 %v1284_v37, %v1549_v36  ;;  %v538_v40 = vadd.f32 %v1316_v38, %v1549_v36 }
  0xd0   :  { %v401_v41 = vpop.f32.mrf.mxu0  ;;  %v529_v42 = vpop.f32.mrf.mxu1 }
  0xd1   :  { %v658_v43 = vmax.f32 %v410_v39, 0.0  ;;  %v690_v44 = vmax.f32 %v538_v40, 0.0  ;;  %v402_v45 = vadd.f32 %v1549_v36, %v401_v41  ;;  %v530_v46 = vadd.f32 %v1549_v36, %v529_v42 }
  0xd2   :  { %v1285_v47 = vpop.f32.mrf.mxu0  ;;  %v1317_v48 = vpop.f32.mrf.mxu1 }
  0xd3   :  { %v1179_v49 = vpack.c.bf16 %v658_v43, %v658_v43  ;;  %v1211_v50 = vpack.c.bf16 %v690_v44, %v690_v44  ;;  %v656_v51 = vmax.f32 %v402_v45, 0.0  ;;  %v688_v52 = vmax.f32 %v530_v46, 0.0 }
  0xd4   :  { %v413_v53 = vadd.f32 %v1285_v47, %v1549_v36  ;;  %v541_v54 = vadd.f32 %v1317_v48, %v1549_v36  ;;  %v404_v55 = vpop.f32.mrf.mxu0  ;;  %v532_v56 = vpop.f32.mrf.mxu1 }
  0xd5   :  { %979 = vst.msk [vmem:[%s1874_s3 + $0x8] sm:$0xf] %vm976_vm2, %v1179_v49  ;;  %1011 = vst.msk [vmem:[%s1874_s3 + $0x88] sm:$0xf] %vm976_vm2, %v1211_v50  ;;  %v1177_v57 = vpack.c.bf16 %v656_v51, %v656_v51  ;;  %v1209_v58 = vpack.c.bf16 %v688_v52, %v688_v52  ;;  %v405_v59 = vadd.f32 %v1549_v36, %v404_v55 }
  0xd6   :  { %v533_v60 = vadd.f32 %v1549_v36, %v532_v56  ;;  %v659_v61 = vmax.f32 %v413_v53, 0.0  ;;  %v691_v62 = vmax.f32 %v541_v54, 0.0  ;;  %v1288_v63 = vpop.f32.mrf.mxu0  ;;  %v1320_v0 = vpop.f32.mrf.mxu1 }
  0xd7   :  { %977 = vst.msk [vmem:[%s1874_s3] sm:$0xf] %vm976_vm2, %v1177_v57  ;;  %1009 = vst.msk [vmem:[%s1874_s3 + $0x80] sm:$0xf] %vm976_vm2, %v1209_v58  ;;  %v657_v1 = vmax.f32 %v405_v59, 0.0  ;;  %v426_v3 = vadd.f32 %v1288_v63, %v1549_v36  ;;  %v554_v4 = vadd.f32 %v1320_v0, %v1549_v36 }
  0xd8   :  { %v689_v2 = vmax.f32 %v533_v60, 0.0  ;;  %v1180_v5 = vpack.c.bf16 %v659_v61, %v659_v61  ;;  %v1212_v6 = vpack.c.bf16 %v691_v62, %v691_v62  ;;  %v417_v7 = vpop.f32.mrf.mxu0  ;;  %v545_v8 = vpop.f32.mrf.mxu1 }
  0xd9   :  { %v1178_v9 = vpack.c.bf16 %v657_v1, %v657_v1  ;;  %v662_v11 = vmax.f32 %v426_v3, 0.0  ;;  %v694_v12 = vmax.f32 %v554_v4, 0.0  ;;  %v418_v13 = vadd.f32 %v1549_v36, %v417_v7 }
  0xda   :  { %v1210_v10 = vpack.c.bf16 %v689_v2, %v689_v2  ;;  %980 = vst.msk [vmem:[%s1874_s3 + $0xc] sm:$0xf] %vm976_vm2, %v1180_v5  ;;  %1012 = vst.msk [vmem:[%s1874_s3 + $0x8c] sm:$0xf] %vm976_vm2, %v1212_v6  ;;  %v546_v14 = vadd.f32 %v1549_v36, %v545_v8  ;;  %v1289_v15 = vpop.f32.mrf.mxu0  ;;  %v1321_v16 = vpop.f32.mrf.mxu1 }
  0xdb   :  { %978 = vst.msk [vmem:[%s1874_s3 + $0x4] sm:$0xf] %vm976_vm2, %v1178_v9  ;;  %v1183_v17 = vpack.c.bf16 %v662_v11, %v662_v11  ;;  %v1215_v18 = vpack.c.bf16 %v694_v12, %v694_v12  ;;  %v429_v19 = vadd.f32 %v1289_v15, %v1549_v36  ;;  %v557_v20 = vadd.f32 %v1321_v16, %v1549_v36 }
  0xdc   :  { %1010 = vst.msk [vmem:[%s1874_s3 + $0x84] sm:$0xf] %vm976_vm2, %v1210_v10  ;;  %v660_v21 = vmax.f32 %v418_v13, 0.0  ;;  %v692_v22 = vmax.f32 %v546_v14, 0.0  ;;  %v420_v23 = vpop.f32.mrf.mxu0  ;;  %v548_v24 = vpop.f32.mrf.mxu1 }
  0xdd   :  { %983 = vst.msk [vmem:[%s1874_s3 + $0x18] sm:$0xf] %vm976_vm2, %v1183_v17  ;;  %1015 = vst.msk [vmem:[%s1874_s3 + $0x98] sm:$0xf] %vm976_vm2, %v1215_v18  ;;  %v663_v25 = vmax.f32 %v429_v19, 0.0  ;;  %v695_v26 = vmax.f32 %v557_v20, 0.0  ;;  %v421_v27 = vadd.f32 %v1549_v36, %v420_v23  ;;  %v549_v28 = vadd.f32 %v1549_v36, %v548_v24 }
  0xde   :  { %v1181_v29 = vpack.c.bf16 %v660_v21, %v660_v21  ;;  %v1213_v30 = vpack.c.bf16 %v692_v22, %v692_v22  ;;  %v1292_v31 = vpop.f32.mrf.mxu0  ;;  %v1324_v32 = vpop.f32.mrf.mxu1 }
  0xdf   :  { %v1184_v33 = vpack.c.bf16 %v663_v25, %v663_v25  ;;  %v1216_v34 = vpack.c.bf16 %v695_v26, %v695_v26  ;;  %v661_v35 = vmax.f32 %v421_v27, 0.0  ;;  %v693_v37 = vmax.f32 %v549_v28, 0.0 }
  0xe0   :  { %981 = vst.msk [vmem:[%s1874_s3 + $0x10] sm:$0xf] %vm976_vm2, %v1181_v29  ;;  %1013 = vst.msk [vmem:[%s1874_s3 + $0x90] sm:$0xf] %vm976_vm2, %v1213_v30  ;;  %v442_v38 = vadd.f32 %v1292_v31, %v1549_v36  ;;  %v570_v39 = vadd.f32 %v1324_v32, %v1549_v36  ;;  %v433_v40 = vpop.f32.mrf.mxu0  ;;  %v561_v41 = vpop.f32.mrf.mxu1 }
  0xe1   :  { %984 = vst.msk [vmem:[%s1874_s3 + $0x1c] sm:$0xf] %vm976_vm2, %v1184_v33  ;;  %1016 = vst.msk [vmem:[%s1874_s3 + $0x9c] sm:$0xf] %vm976_vm2, %v1216_v34  ;;  %v1182_v42 = vpack.c.bf16 %v661_v35, %v661_v35  ;;  %v1214_v43 = vpack.c.bf16 %v693_v37, %v693_v37  ;;  %v434_v44 = vadd.f32 %v1549_v36, %v433_v40 }
  0xe2   :  { %v562_v45 = vadd.f32 %v1549_v36, %v561_v41  ;;  %v666_v46 = vmax.f32 %v442_v38, 0.0  ;;  %v698_v47 = vmax.f32 %v570_v39, 0.0  ;;  %v1293_v48 = vpop.f32.mrf.mxu0  ;;  %v1325_v49 = vpop.f32.mrf.mxu1 }
  0xe3   :  { %982 = vst.msk [vmem:[%s1874_s3 + $0x14] sm:$0xf] %vm976_vm2, %v1182_v42  ;;  %1014 = vst.msk [vmem:[%s1874_s3 + $0x94] sm:$0xf] %vm976_vm2, %v1214_v43  ;;  %v664_v50 = vmax.f32 %v434_v44, 0.0  ;;  %v445_v52 = vadd.f32 %v1293_v48, %v1549_v36  ;;  %v573_v53 = vadd.f32 %v1325_v49, %v1549_v36 }
  0xe4   :  { %v696_v51 = vmax.f32 %v562_v45, 0.0  ;;  %v1187_v54 = vpack.c.bf16 %v666_v46, %v666_v46  ;;  %v1219_v55 = vpack.c.bf16 %v698_v47, %v698_v47  ;;  %v436_v56 = vpop.f32.mrf.mxu0  ;;  %v564_v57 = vpop.f32.mrf.mxu1 }
  0xe5   :  { %v1185_v58 = vpack.c.bf16 %v664_v50, %v664_v50  ;;  %v667_v60 = vmax.f32 %v445_v52, 0.0  ;;  %v699_v61 = vmax.f32 %v573_v53, 0.0  ;;  %v437_v62 = vadd.f32 %v1549_v36, %v436_v56 }
  0xe6   :  { %v1217_v59 = vpack.c.bf16 %v696_v51, %v696_v51  ;;  %987 = vst.msk [vmem:[%s1874_s3 + $0x28] sm:$0xf] %vm976_vm2, %v1187_v54  ;;  %1019 = vst.msk [vmem:[%s1874_s3 + $0xa8] sm:$0xf] %vm976_vm2, %v1219_v55  ;;  %v565_v63 = vadd.f32 %v1549_v36, %v564_v57  ;;  %v1296_v0 = vpop.f32.mrf.mxu0  ;;  %v1328_v1 = vpop.f32.mrf.mxu1 }
  0xe7   :  { %985 = vst.msk [vmem:[%s1874_s3 + $0x20] sm:$0xf] %vm976_vm2, %v1185_v58  ;;  %v1188_v2 = vpack.c.bf16 %v667_v60, %v667_v60  ;;  %v1220_v3 = vpack.c.bf16 %v699_v61, %v699_v61  ;;  %v458_v4 = vadd.f32 %v1296_v0, %v1549_v36  ;;  %v586_v5 = vadd.f32 %v1328_v1, %v1549_v36 }
  0xe8   :  { %1017 = vst.msk [vmem:[%s1874_s3 + $0xa0] sm:$0xf] %vm976_vm2, %v1217_v59  ;;  %v665_v6 = vmax.f32 %v437_v62, 0.0  ;;  %v697_v7 = vmax.f32 %v565_v63, 0.0  ;;  %v449_v8 = vpop.f32.mrf.mxu0  ;;  %v577_v9 = vpop.f32.mrf.mxu1 }
  0xe9   :  { %988 = vst.msk [vmem:[%s1874_s3 + $0x2c] sm:$0xf] %vm976_vm2, %v1188_v2  ;;  %1020 = vst.msk [vmem:[%s1874_s3 + $0xac] sm:$0xf] %vm976_vm2, %v1220_v3  ;;  %v670_v10 = vmax.f32 %v458_v4, 0.0  ;;  %v702_v11 = vmax.f32 %v586_v5, 0.0  ;;  %v450_v12 = vadd.f32 %v1549_v36, %v449_v8  ;;  %v578_v13 = vadd.f32 %v1549_v36, %v577_v9 }
  0xea   :  { %v1186_v14 = vpack.c.bf16 %v665_v6, %v665_v6  ;;  %v1218_v15 = vpack.c.bf16 %v697_v7, %v697_v7  ;;  %v1297_v16 = vpop.f32.mrf.mxu0  ;;  %v1329_v17 = vpop.f32.mrf.mxu1 }
  0xeb   :  { %v1191_v18 = vpack.c.bf16 %v670_v10, %v670_v10  ;;  %v1223_v19 = vpack.c.bf16 %v702_v11, %v702_v11  ;;  %v668_v20 = vmax.f32 %v450_v12, 0.0  ;;  %v700_v21 = vmax.f32 %v578_v13, 0.0 }
  0xec   :  { %986 = vst.msk [vmem:[%s1874_s3 + $0x24] sm:$0xf] %vm976_vm2, %v1186_v14  ;;  %1018 = vst.msk [vmem:[%s1874_s3 + $0xa4] sm:$0xf] %vm976_vm2, %v1218_v15  ;;  %v461_v22 = vadd.f32 %v1297_v16, %v1549_v36  ;;  %v589_v23 = vadd.f32 %v1329_v17, %v1549_v36  ;;  %v452_v24 = vpop.f32.mrf.mxu0  ;;  %v580_v25 = vpop.f32.mrf.mxu1 }
  0xed   :  { %991 = vst.msk [vmem:[%s1874_s3 + $0x38] sm:$0xf] %vm976_vm2, %v1191_v18  ;;  %1023 = vst.msk [vmem:[%s1874_s3 + $0xb8] sm:$0xf] %vm976_vm2, %v1223_v19  ;;  %v1189_v26 = vpack.c.bf16 %v668_v20, %v668_v20  ;;  %v1221_v27 = vpack.c.bf16 %v700_v21, %v700_v21  ;;  %v453_v28 = vadd.f32 %v1549_v36, %v452_v24 }
  0xee   :  { %v581_v29 = vadd.f32 %v1549_v36, %v580_v25  ;;  %v671_v30 = vmax.f32 %v461_v22, 0.0  ;;  %v703_v31 = vmax.f32 %v589_v23, 0.0  ;;  %v1300_v32 = vpop.f32.mrf.mxu0  ;;  %v1332_v33 = vpop.f32.mrf.mxu1 }
  0xef   :  { %989 = vst.msk [vmem:[%s1874_s3 + $0x30] sm:$0xf] %vm976_vm2, %v1189_v26  ;;  %1021 = vst.msk [vmem:[%s1874_s3 + $0xb0] sm:$0xf] %vm976_vm2, %v1221_v27  ;;  %v669_v34 = vmax.f32 %v453_v28, 0.0  ;;  %v474_v37 = vadd.f32 %v1300_v32, %v1549_v36  ;;  %v602_v38 = vadd.f32 %v1332_v33, %v1549_v36 }
  0xf0   :  { %v701_v35 = vmax.f32 %v581_v29, 0.0  ;;  %v1192_v39 = vpack.c.bf16 %v671_v30, %v671_v30  ;;  %v1224_v40 = vpack.c.bf16 %v703_v31, %v703_v31  ;;  %v465_v41 = vpop.f32.mrf.mxu0  ;;  %v593_v42 = vpop.f32.mrf.mxu1 }
  0xf1   :  { %v1190_v43 = vpack.c.bf16 %v669_v34, %v669_v34  ;;  %v674_v45 = vmax.f32 %v474_v37, 0.0  ;;  %v706_v46 = vmax.f32 %v602_v38, 0.0  ;;  %v466_v47 = vadd.f32 %v1549_v36, %v465_v41 }
  0xf2   :  { %v1222_v44 = vpack.c.bf16 %v701_v35, %v701_v35  ;;  %992 = vst.msk [vmem:[%s1874_s3 + $0x3c] sm:$0xf] %vm976_vm2, %v1192_v39  ;;  %1024 = vst.msk [vmem:[%s1874_s3 + $0xbc] sm:$0xf] %vm976_vm2, %v1224_v40  ;;  %v594_v48 = vadd.f32 %v1549_v36, %v593_v42  ;;  %v1301_v49 = vpop.f32.mrf.mxu0  ;;  %v1333_v50 = vpop.f32.mrf.mxu1 }
  0xf3   :  { %990 = vst.msk [vmem:[%s1874_s3 + $0x34] sm:$0xf] %vm976_vm2, %v1190_v43  ;;  %v1195_v51 = vpack.c.bf16 %v674_v45, %v674_v45  ;;  %v1227_v52 = vpack.c.bf16 %v706_v46, %v706_v46  ;;  %v477_v53 = vadd.f32 %v1301_v49, %v1549_v36  ;;  %v605_v54 = vadd.f32 %v1333_v50, %v1549_v36 }
  0xf4   :  { %1022 = vst.msk [vmem:[%s1874_s3 + $0xb4] sm:$0xf] %vm976_vm2, %v1222_v44  ;;  %v672_v55 = vmax.f32 %v466_v47, 0.0  ;;  %v704_v56 = vmax.f32 %v594_v48, 0.0  ;;  %v468_v57 = vpop.f32.mrf.mxu0  ;;  %v596_v58 = vpop.f32.mrf.mxu1 }
  0xf5   :  { %995 = vst.msk [vmem:[%s1874_s3 + $0x48] sm:$0xf] %vm976_vm2, %v1195_v51  ;;  %1027 = vst.msk [vmem:[%s1874_s3 + $0xc8] sm:$0xf] %vm976_vm2, %v1227_v52  ;;  %v675_v59 = vmax.f32 %v477_v53, 0.0  ;;  %v707_v60 = vmax.f32 %v605_v54, 0.0  ;;  %v469_v61 = vadd.f32 %v1549_v36, %v468_v57  ;;  %v597_v62 = vadd.f32 %v1549_v36, %v596_v58 }
  0xf6   :  { %v1193_v63 = vpack.c.bf16 %v672_v55, %v672_v55  ;;  %v1225_v0 = vpack.c.bf16 %v704_v56, %v704_v56  ;;  %v1304_v1 = vpop.f32.mrf.mxu0  ;;  %v1336_v2 = vpop.f32.mrf.mxu1 }
  0xf7   :  { %v1196_v3 = vpack.c.bf16 %v675_v59, %v675_v59  ;;  %v1228_v4 = vpack.c.bf16 %v707_v60, %v707_v60  ;;  %v673_v5 = vmax.f32 %v469_v61, 0.0  ;;  %v705_v6 = vmax.f32 %v597_v62, 0.0 }
  0xf8   :  { %993 = vst.msk [vmem:[%s1874_s3 + $0x40] sm:$0xf] %vm976_vm2, %v1193_v63  ;;  %1025 = vst.msk [vmem:[%s1874_s3 + $0xc0] sm:$0xf] %vm976_vm2, %v1225_v0  ;;  %v490_v7 = vadd.f32 %v1304_v1, %v1549_v36  ;;  %v618_v8 = vadd.f32 %v1336_v2, %v1549_v36  ;;  %v481_v9 = vpop.f32.mrf.mxu0  ;;  %v609_v10 = vpop.f32.mrf.mxu1 }
  0xf9   :  { %996 = vst.msk [vmem:[%s1874_s3 + $0x4c] sm:$0xf] %vm976_vm2, %v1196_v3  ;;  %1028 = vst.msk [vmem:[%s1874_s3 + $0xcc] sm:$0xf] %vm976_vm2, %v1228_v4  ;;  %v1194_v11 = vpack.c.bf16 %v673_v5, %v673_v5  ;;  %v1226_v12 = vpack.c.bf16 %v705_v6, %v705_v6  ;;  %v482_v13 = vadd.f32 %v1549_v36, %v481_v9 }
  0xfa   :  { %v610_v14 = vadd.f32 %v1549_v36, %v609_v10  ;;  %v678_v15 = vmax.f32 %v490_v7, 0.0  ;;  %v710_v16 = vmax.f32 %v618_v8, 0.0  ;;  %v1305_v17 = vpop.f32.mrf.mxu0  ;;  %v1337_v18 = vpop.f32.mrf.mxu1 }
  0xfb   :  { %994 = vst.msk [vmem:[%s1874_s3 + $0x44] sm:$0xf] %vm976_vm2, %v1194_v11  ;;  %1026 = vst.msk [vmem:[%s1874_s3 + $0xc4] sm:$0xf] %vm976_vm2, %v1226_v12  ;;  %v676_v19 = vmax.f32 %v482_v13, 0.0  ;;  %v493_v21 = vadd.f32 %v1305_v17, %v1549_v36  ;;  %v621_v22 = vadd.f32 %v1337_v18, %v1549_v36 }
  0xfc   :  { %v708_v20 = vmax.f32 %v610_v14, 0.0  ;;  %v1199_v23 = vpack.c.bf16 %v678_v15, %v678_v15  ;;  %v1231_v24 = vpack.c.bf16 %v710_v16, %v710_v16  ;;  %v484_v25 = vpop.f32.mrf.mxu0  ;;  %v612_v26 = vpop.f32.mrf.mxu1 }
  0xfd   :  { %v1197_v27 = vpack.c.bf16 %v676_v19, %v676_v19  ;;  %v679_v29 = vmax.f32 %v493_v21, 0.0  ;;  %v711_v30 = vmax.f32 %v621_v22, 0.0  ;;  %v485_v31 = vadd.f32 %v1549_v36, %v484_v25 }
  0xfe   :  { %v1229_v28 = vpack.c.bf16 %v708_v20, %v708_v20  ;;  %999 = vst.msk [vmem:[%s1874_s3 + $0x58] sm:$0xf] %vm976_vm2, %v1199_v23  ;;  %1031 = vst.msk [vmem:[%s1874_s3 + $0xd8] sm:$0xf] %vm976_vm2, %v1231_v24  ;;  %v613_v32 = vadd.f32 %v1549_v36, %v612_v26  ;;  %v1308_v33 = vpop.f32.mrf.mxu0  ;;  %v1340_v34 = vpop.f32.mrf.mxu1 }
  0xff   :  { %997 = vst.msk [vmem:[%s1874_s3 + $0x50] sm:$0xf] %vm976_vm2, %v1197_v27  ;;  %v1200_v35 = vpack.c.bf16 %v679_v29, %v679_v29  ;;  %v1232_v37 = vpack.c.bf16 %v711_v30, %v711_v30  ;;  %v506_v38 = vadd.f32 %v1308_v33, %v1549_v36  ;;  %v634_v39 = vadd.f32 %v1340_v34, %v1549_v36 }
 0x100   :  { %1029 = vst.msk [vmem:[%s1874_s3 + $0xd0] sm:$0xf] %vm976_vm2, %v1229_v28  ;;  %v677_v40 = vmax.f32 %v485_v31, 0.0  ;;  %v709_v41 = vmax.f32 %v613_v32, 0.0  ;;  %v497_v42 = vpop.f32.mrf.mxu0  ;;  %v625_v43 = vpop.f32.mrf.mxu1 }
 0x101   :  { %1000 = vst.msk [vmem:[%s1874_s3 + $0x5c] sm:$0xf] %vm976_vm2, %v1200_v35  ;;  %1032 = vst.msk [vmem:[%s1874_s3 + $0xdc] sm:$0xf] %vm976_vm2, %v1232_v37  ;;  %v682_v44 = vmax.f32 %v506_v38, 0.0  ;;  %v714_v45 = vmax.f32 %v634_v39, 0.0  ;;  %v498_v46 = vadd.f32 %v1549_v36, %v497_v42  ;;  %v626_v47 = vadd.f32 %v1549_v36, %v625_v43 }
 0x102   :  { %v1198_v48 = vpack.c.bf16 %v677_v40, %v677_v40  ;;  %v1230_v49 = vpack.c.bf16 %v709_v41, %v709_v41  ;;  %v1309_v50 = vpop.f32.mrf.mxu0  ;;  %v1341_v51 = vpop.f32.mrf.mxu1 }
 0x103   :  { %v1203_v52 = vpack.c.bf16 %v682_v44, %v682_v44  ;;  %v1235_v53 = vpack.c.bf16 %v714_v45, %v714_v45  ;;  %v680_v54 = vmax.f32 %v498_v46, 0.0  ;;  %v712_v55 = vmax.f32 %v626_v47, 0.0 }
 0x104   :  { %998 = vst.msk [vmem:[%s1874_s3 + $0x54] sm:$0xf] %vm976_vm2, %v1198_v48  ;;  %1030 = vst.msk [vmem:[%s1874_s3 + $0xd4] sm:$0xf] %vm976_vm2, %v1230_v49  ;;  %v509_v56 = vadd.f32 %v1309_v50, %v1549_v36  ;;  %v637_v57 = vadd.f32 %v1341_v51, %v1549_v36  ;;  %v500_v58 = vpop.f32.mrf.mxu0  ;;  %v628_v59 = vpop.f32.mrf.mxu1 }
 0x105   :  { %1003 = vst.msk [vmem:[%s1874_s3 + $0x68] sm:$0xf] %vm976_vm2, %v1203_v52  ;;  %1035 = vst.msk [vmem:[%s1874_s3 + $0xe8] sm:$0xf] %vm976_vm2, %v1235_v53  ;;  %v1201_v60 = vpack.c.bf16 %v680_v54, %v680_v54  ;;  %v1233_v61 = vpack.c.bf16 %v712_v55, %v712_v55  ;;  %v501_v62 = vadd.f32 %v1549_v36, %v500_v58 }
 0x106   :  { %v629_v63 = vadd.f32 %v1549_v36, %v628_v59  ;;  %v683_v0 = vmax.f32 %v509_v56, 0.0  ;;  %v715_v1 = vmax.f32 %v637_v57, 0.0  ;;  %v1312_v2 = vpop.f32.mrf.mxu0  ;;  %v1344_v3 = vpop.f32.mrf.mxu1 }
 0x107   :  { %1001 = vst.msk [vmem:[%s1874_s3 + $0x60] sm:$0xf] %vm976_vm2, %v1201_v60  ;;  %1033 = vst.msk [vmem:[%s1874_s3 + $0xe0] sm:$0xf] %vm976_vm2, %v1233_v61  ;;  %v681_v4 = vmax.f32 %v501_v62, 0.0  ;;  %v522_v6 = vadd.f32 %v1312_v2, %v1549_v36  ;;  %v650_v7 = vadd.f32 %v1344_v3, %v1549_v36 }
 0x108   :  { %v713_v5 = vmax.f32 %v629_v63, 0.0  ;;  %v1204_v8 = vpack.c.bf16 %v683_v0, %v683_v0  ;;  %v1236_v9 = vpack.c.bf16 %v715_v1, %v715_v1  ;;  %v513_v10 = vpop.f32.mrf.mxu0  ;;  %v641_v11 = vpop.f32.mrf.mxu1 }
 0x109   :  { %v1202_v12 = vpack.c.bf16 %v681_v4, %v681_v4  ;;  %v686_v14 = vmax.f32 %v522_v6, 0.0  ;;  %v718_v15 = vmax.f32 %v650_v7, 0.0  ;;  %v514_v16 = vadd.f32 %v1549_v36, %v513_v10 }
 0x10a   :  { %v1234_v13 = vpack.c.bf16 %v713_v5, %v713_v5  ;;  %1004 = vst.msk [vmem:[%s1874_s3 + $0x6c] sm:$0xf] %vm976_vm2, %v1204_v8  ;;  %1036 = vst.msk [vmem:[%s1874_s3 + $0xec] sm:$0xf] %vm976_vm2, %v1236_v9  ;;  %v642_v17 = vadd.f32 %v1549_v36, %v641_v11  ;;  %v1313_v18 = vpop.f32.mrf.mxu0  ;;  %v1345_v19 = vpop.f32.mrf.mxu1 }
 0x10b   :  { %1002 = vst.msk [vmem:[%s1874_s3 + $0x64] sm:$0xf] %vm976_vm2, %v1202_v12  ;;  %v1207_v20 = vpack.c.bf16 %v686_v14, %v686_v14  ;;  %v1239_v21 = vpack.c.bf16 %v718_v15, %v718_v15  ;;  %v525_v22 = vadd.f32 %v1313_v18, %v1549_v36  ;;  %v653_v23 = vadd.f32 %v1345_v19, %v1549_v36 }
 0x10c   :  { %1034 = vst.msk [vmem:[%s1874_s3 + $0xe4] sm:$0xf] %vm976_vm2, %v1234_v13  ;;  %v684_v24 = vmax.f32 %v514_v16, 0.0  ;;  %v716_v25 = vmax.f32 %v642_v17, 0.0  ;;  %v516_v26 = vpop.f32.mrf.mxu0  ;;  %v644_v27 = vpop.f32.mrf.mxu1 }
 0x10d   :  { %1007 = vst.msk [vmem:[%s1874_s3 + $0x78] sm:$0xf] %vm976_vm2, %v1207_v20  ;;  %1039 = vst.msk [vmem:[%s1874_s3 + $0xf8] sm:$0xf] %vm976_vm2, %v1239_v21  ;;  %v687_v28 = vmax.f32 %v525_v22, 0.0  ;;  %v719_v29 = vmax.f32 %v653_v23, 0.0  ;;  %v517_v30 = vadd.f32 %v1549_v36, %v516_v26  ;;  %v645_v31 = vadd.f32 %v1549_v36, %v644_v27 }
 0x10e   :  { %v1205_v32 = vpack.c.bf16 %v684_v24, %v684_v24  ;;  %v1237_v33 = vpack.c.bf16 %v716_v25, %v716_v25 }
 0x10f   :  { %v1208_v34 = vpack.c.bf16 %v687_v28, %v687_v28  ;;  %v1240_v35 = vpack.c.bf16 %v719_v29, %v719_v29  ;;  %v685_v37 = vmax.f32 %v517_v30, 0.0  ;;  %v717_v38 = vmax.f32 %v645_v31, 0.0 }
 0x110   :  { %1005 = vst.msk [vmem:[%s1874_s3 + $0x70] sm:$0xf] %vm976_vm2, %v1205_v32  ;;  %1037 = vst.msk [vmem:[%s1874_s3 + $0xf0] sm:$0xf] %vm976_vm2, %v1237_v33 }
 0x111   :  { %1008 = vst.msk [vmem:[%s1874_s3 + $0x7c] sm:$0xf] %vm976_vm2, %v1208_v34  ;;  %1040 = vst.msk [vmem:[%s1874_s3 + $0xfc] sm:$0xf] %vm976_vm2, %v1240_v35  ;;  %v1206_v36 = vpack.c.bf16 %v685_v37, %v685_v37  ;;  %v1238_v39 = vpack.c.bf16 %v717_v38, %v717_v38 }
 0x113   :  { %1006 = vst.msk [vmem:[%s1874_s3 + $0x74] sm:$0xf] %vm976_vm2, %v1206_v36  ;;  %1038 = vst.msk [vmem:[%s1874_s3 + $0xf4] sm:$0xf] %vm976_vm2, %v1238_v39 }

// kernel: cnn_dqn_forward.5
= control target key start
LH: loop header
LB: loop body
LE: loop exit
PB: predicated region body
PF: predicated region fallthrough
CT: control target
= control target key end

     0   :  { %v467_v0 = vmov 0   ;;  %vm167_vm0 = vcmask 130048   ;;  %vm343_vm1 = vcmask 519168   ;;  %vm356_vm2 = vcmask 516096   ;;  %s630_s1 = inlined_call_operand.vmem [shape: bf16[144,64], index: 1, kind: input, shape index: {}]   ;;  %s631_s0 = inlined_call_operand.vmem [shape: bf16[98,144], index: 0, kind: input, shape index: {}]   ;;  %s632_s2 = inlined_call_operand.vmem [shape: f32[1,64], index: 2, kind: input, shape index: {}]   ;;  %s633_s3 = inlined_call_operand.vmem [shape: bf16[98,64], index: 3, kind: output, shape index: {}]  }
   0x1   :  { %189 = vmatprep.subr.bf16.mxu0 %v467_v0  ;;  %v438_v1 = vld [vmem:[%s630_s1 + $0x38] sm:$0xff]   ;;  %419 = vmatprep.subr.bf16.mxu1 %v467_v0  ;;  %v439_v2 = vld [vmem:[%s630_s1 + $0x30] sm:$0xff]   ;;  %v440_v3 = vld [vmem:[%s630_s1 + $0x28] sm:$0xff]  }
   0x2   :  { %190 = vmatpush1.bf16.msra.mxu0 %v438_v1  ;;  %428 = vmatpush1.bf16.msra.mxu1 %v438_v1  ;;  %v441_v4 = vld [vmem:[%s630_s1 + $0x20] sm:$0xff]   ;;  %v442_v7 = vld [vmem:[%s630_s1 + $0x18] sm:$0xff]   ;;  %v443_v8 = vld [vmem:[%s630_s1 + $0x10] sm:$0xff]  }
   0x3   :  { %191 = vmatprep.subr.bf16.mxu0 %v467_v0  ;;  %420 = vmatprep.subr.bf16.mxu1 %v467_v0  ;;  %v449_v5 = vld [vmem:[%s631_s0 + $0x4] ss:$8 sps:$4 sm:$0xff]   ;;  %v447_v12 = vld [vmem:[%s631_s0] ss:$8 sps:$4 sm:$0xff]   ;;  %v453_v14 = vld [vmem:[%s631_s0 + $0x14] ss:$8 sps:$4 sm:$0xff]  }
   0x4   :  { %v452_v6 = vld [vmem:[%s631_s0 + $0x44] ss:$8 sps:$4 sm:$0xff]   ;;  %386 = vmatprep.mubr.msk.bf16.mxu0 %vm167_vm0, %v449_v5  ;;  %v450_v13 = vld [vmem:[%s631_s0 + $0x40] ss:$8 sps:$4 sm:$0xff]   ;;  %v456_v15 = vld [vmem:[%s631_s0 + $0x54] ss:$8 sps:$4 sm:$0xff]  }
   0x5   :  { %390 = vmatprep.mubr.msk.bf16.mxu1 %vm167_vm0, %v452_v6  ;;  %v444_v9 = vld [vmem:[%s630_s1 + $0x8] sm:$0xff]   ;;  %v445_v10 = vld [vmem:[%s630_s1] sm:$0xff]   ;;  %v455_v17 = vld [vmem:[%s631_s0 + $0x10] ss:$8 sps:$4 sm:$0xff]  }
   0x6   :  { %192 = vmatpush1.bf16.msra.mxu0 %v439_v2  ;;  %429 = vmatpush1.bf16.msra.mxu1 %v439_v2  ;;  %v446_v11 = vld [vmem:[%s630_s1 + $0x40] sm:$0xff]   ;;  %v458_v18 = vld [vmem:[%s631_s0 + $0x50] ss:$8 sps:$4 sm:$0xff]   ;;  %v464_v23 = vld [vmem:[%s631_s0 + $0x34] ss:$8 sps:$4 sm:$0xff]  }
   0x7   :  { %193 = vmatprep.subr.bf16.mxu0 %v467_v0  ;;  %421 = vmatprep.subr.bf16.mxu1 %v467_v0  ;;  %v27_v16 = vld [vmem:[%s631_s0 + $0x60] sm:$0x11]  ;;  %v466_v24 = vld [vmem:[%s631_s0 + $0x30] ss:$8 sps:$4 sm:$0xff]  }
   0x8   :  { %v459_v19 = vld [vmem:[%s631_s0 + $0x24] ss:$8 sps:$4 sm:$0xff]   ;;  %v376_v20 = vcombine.high %v27_v16, %v27_v16  ;;  %v461_v21 = vld [vmem:[%s631_s0 + $0x20] ss:$8 sps:$4 sm:$0xff]   ;;  %v375_v22 = vcombine.low %v27_v16, %v27_v16 }
   0x9   :  { %v564_v25 = vld [vmem:[%s632_s2] ss:$0 sm:$0xff] }
   0xa   :  { %194 = vmatpush1.bf16.msra.mxu0 %v440_v3  ;;  %430 = vmatpush1.bf16.msra.mxu1 %v440_v3 }
   0xb   :  { %195 = vmatprep.subr.bf16.mxu0 %v467_v0  ;;  %422 = vmatprep.subr.bf16.mxu1 %v467_v0 }
   0xe   :  { %196 = vmatpush1.bf16.msra.mxu0 %v441_v4  ;;  %431 = vmatpush1.bf16.msra.mxu1 %v441_v4 }
   0xf   :  { %197 = vmatprep.subr.bf16.mxu0 %v467_v0  ;;  %423 = vmatprep.subr.bf16.mxu1 %v467_v0 }
  0x12   :  { %198 = vmatpush1.bf16.msra.mxu0 %v442_v7  ;;  %432 = vmatpush1.bf16.msra.mxu1 %v442_v7 }
  0x13   :  { %199 = vmatprep.subr.bf16.mxu0 %v467_v0  ;;  %424 = vmatprep.subr.bf16.mxu1 %v467_v0 }
  0x16   :  { %200 = vmatpush1.bf16.msra.mxu0 %v443_v8  ;;  %433 = vmatpush1.bf16.msra.mxu1 %v443_v8 }
  0x17   :  { %201 = vmatprep.subr.bf16.mxu0 %v467_v0  ;;  %425 = vmatprep.subr.bf16.mxu1 %v467_v0 }
  0x1a   :  { %202 = vmatpush1.bf16.msra.mxu0 %v444_v9  ;;  %434 = vmatpush1.bf16.msra.mxu1 %v444_v9 }
  0x1b   :  { %203 = vmatprep.subr.bf16.mxu0 %v467_v0  ;;  %426 = vmatprep.subr.bf16.mxu1 %v467_v0 }
  0x1e   :  { %204 = vmatpush1.bf16.msra.mxu0 %v445_v10  ;;  %435 = vmatpush1.bf16.msra.mxu1 %v445_v10 }
  0x1f   :  { %219 = vmatprep.subr.bf16.mxu0 %v467_v0  ;;  %427 = vmatprep.subr.bf16.mxu1 %v467_v0 }
  0x22   :  { %220 = vmatpush2.bf16.msra.mxu0 %v446_v11  ;;  %436 = vmatpush2.bf16.msra.mxu1 %v446_v11 }
  0x25   :  { %222 = vmatmul.mubr.bf16.vlgmr.msra.gmra.mxu0 %v447_v12  ;;  %254 = vmatmul.mubr.bf16.vlgmr.msra.gmra.mxu1 %v450_v13 }
  0x26   :  { %387 = vmatprep.mubr.msk.bf16.mxu0 %vm167_vm0, %v453_v14  ;;  %391 = vmatprep.mubr.msk.bf16.mxu1 %vm167_vm0, %v456_v15 }
  0x2d   :  { %230 = vmatmul.mubr.bf16.gmra.mxu0 %v455_v17  ;;  %262 = vmatmul.mubr.bf16.gmra.mxu1 %v458_v18 }
  0x2e   :  { %388 = vmatprep.mubr.msk.bf16.mxu0 %vm167_vm0, %v459_v19  ;;  %392 = vmatprep.mubr.msk.bf16.mxu1 %vm167_vm0, %v376_v20 }
  0x35   :  { %238 = vmatmul.mubr.bf16.gmra.mxu0 %v461_v21  ;;  %270 = vmatmul.mubr.bf16.gmra.mxu1 %v375_v22 }
  0x36   :  { %389 = vmatprep.mubr.msk.bf16.mxu0 %vm167_vm0, %v464_v23 }
  0x3d   :  { %246 = vmatmul.mubr.bf16.gmra.mxu0 %v466_v24 }
  0xe5   :  { %v223_v26 = vpop.f32.mrf.mxu0  ;;  %v255_v27 = vpop.f32.mrf.mxu1 }
  0xe6   :  { %v224_v28 = vadd.f32 %v564_v25, %v223_v26  ;;  %v256_v29 = vadd.f32 %v564_v25, %v255_v27 }
  0xe7   :  { %v225_v30 = vpop.f32.mrf.mxu0  ;;  %v257_v31 = vpop.f32.mrf.mxu1 }
  0xe8   :  { %v277_v32 = vmax.f32 %v224_v28, 0.0  ;;  %v285_v33 = vmax.f32 %v256_v29, 0.0 }
  0xe9   :  { %v226_v34 = vpop.f32.mrf.mxu0  ;;  %v258_v35 = vpop.f32.mrf.mxu1 }
  0xea   :  { %v406_v36 = vpack.c.bf16 %v277_v32, %v277_v32  ;;  %v227_v37 = vadd.f32 %v564_v25, %v226_v34  ;;  %v414_v38 = vpack.c.bf16 %v285_v33, %v285_v33  ;;  %v259_v39 = vadd.f32 %v564_v25, %v258_v35 }
  0xeb   :  { %v228_v40 = vpop.f32.mrf.mxu0  ;;  %v260_v41 = vpop.f32.mrf.mxu1 }
  0xec   :  { %344 = vst.msk [vmem:[%s633_s3] sm:$0xf] %vm343_vm1, %v406_v36  ;;  %v278_v42 = vmax.f32 %v227_v37, 0.0  ;;  %352 = vst.msk [vmem:[%s633_s3 + $0x20] sm:$0xf] %vm343_vm1, %v414_v38  ;;  %v286_v43 = vmax.f32 %v259_v39, 0.0 }
  0xed   :  { %v231_v44 = vpop.f32.mrf.mxu0  ;;  %v263_v45 = vpop.f32.mrf.mxu1 }
  0xee   :  { %v407_v46 = vpack.c.bf16 %v278_v42, %v278_v42  ;;  %v232_v47 = vadd.f32 %v564_v25, %v231_v44  ;;  %v415_v48 = vpack.c.bf16 %v286_v43, %v286_v43  ;;  %v264_v49 = vadd.f32 %v564_v25, %v263_v45 }
  0xef   :  { %v233_v50 = vpop.f32.mrf.mxu0  ;;  %v265_v51 = vpop.f32.mrf.mxu1 }
  0xf0   :  { %345 = vst.msk [vmem:[%s633_s3 + $0x4] sm:$0xf] %vm343_vm1, %v407_v46  ;;  %v279_v52 = vmax.f32 %v232_v47, 0.0  ;;  %353 = vst.msk [vmem:[%s633_s3 + $0x24] sm:$0xf] %vm343_vm1, %v415_v48  ;;  %v287_v53 = vmax.f32 %v264_v49, 0.0 }
  0xf1   :  { %v234_v54 = vpop.f32.mrf.mxu0  ;;  %v266_v55 = vpop.f32.mrf.mxu1 }
  0xf2   :  { %v408_v56 = vpack.c.bf16 %v279_v52, %v279_v52  ;;  %v235_v57 = vadd.f32 %v564_v25, %v234_v54  ;;  %v416_v58 = vpack.c.bf16 %v287_v53, %v287_v53  ;;  %v267_v59 = vadd.f32 %v564_v25, %v266_v55 }
  0xf3   :  { %v236_v60 = vpop.f32.mrf.mxu0  ;;  %v268_v61 = vpop.f32.mrf.mxu1 }
  0xf4   :  { %346 = vst.msk [vmem:[%s633_s3 + $0x8] sm:$0xf] %vm343_vm1, %v408_v56  ;;  %v280_v62 = vmax.f32 %v235_v57, 0.0  ;;  %354 = vst.msk [vmem:[%s633_s3 + $0x28] sm:$0xf] %vm343_vm1, %v416_v58  ;;  %v288_v63 = vmax.f32 %v267_v59, 0.0 }
  0xf5   :  { %v239_v0 = vpop.f32.mrf.mxu0  ;;  %v271_v1 = vpop.f32.mrf.mxu1 }
  0xf6   :  { %v409_v2 = vpack.c.bf16 %v280_v62, %v280_v62  ;;  %v240_v3 = vadd.f32 %v564_v25, %v239_v0  ;;  %v417_v4 = vpack.c.bf16 %v288_v63, %v288_v63  ;;  %v272_v5 = vadd.f32 %v564_v25, %v271_v1 }
  0xf7   :  { %v241_v6 = vpop.f32.mrf.mxu0  ;;  %v273_v7 = vpop.f32.mrf.mxu1 }
  0xf8   :  { %347 = vst.msk [vmem:[%s633_s3 + $0xc] sm:$0xf] %vm343_vm1, %v409_v2  ;;  %v281_v8 = vmax.f32 %v240_v3, 0.0  ;;  %355 = vst.msk [vmem:[%s633_s3 + $0x2c] sm:$0xf] %vm343_vm1, %v417_v4  ;;  %v289_v9 = vmax.f32 %v272_v5, 0.0 }
  0xf9   :  { %v242_v10 = vpop.f32.mrf.mxu0  ;;  %v274_v11 = vpop.f32.mrf.mxu1 }
  0xfa   :  { %v410_v12 = vpack.c.bf16 %v281_v8, %v281_v8  ;;  %v243_v13 = vadd.f32 %v564_v25, %v242_v10  ;;  %v418_v14 = vpack.c.bf16 %v289_v9, %v289_v9 }
  0xfb   :  { %v244_v15 = vpop.f32.mrf.mxu0  ;;  %v275_v16 = vpop.f32.mrf.mxu1 }
  0xfc   :  { %348 = vst.msk [vmem:[%s633_s3 + $0x10] sm:$0xf] %vm343_vm1, %v410_v12  ;;  %v282_v17 = vmax.f32 %v243_v13, 0.0 }
  0xfd   :  { %357 = vst.msk [vmem:[%s633_s3 + $0x30] sm:$0x1] %vm356_vm2, %v418_v14  ;;  %v247_v18 = vpop.f32.mrf.mxu0 }
  0xfe   :  { %v411_v19 = vpack.c.bf16 %v282_v17, %v282_v17  ;;  %v248_v20 = vadd.f32 %v564_v25, %v247_v18 }
  0xff   :  { %v249_v21 = vpop.f32.mrf.mxu0 }
 0x100   :  { %349 = vst.msk [vmem:[%s633_s3 + $0x14] sm:$0xf] %vm343_vm1, %v411_v19  ;;  %v283_v22 = vmax.f32 %v248_v20, 0.0 }
 0x101   :  { %v250_v23 = vpop.f32.mrf.mxu0 }
 0x102   :  { %v412_v24 = vpack.c.bf16 %v283_v22, %v283_v22  ;;  %v251_v26 = vadd.f32 %v564_v25, %v250_v23 }
 0x103   :  { %v252_v27 = vpop.f32.mrf.mxu0 }
 0x104   :  { %350 = vst.msk [vmem:[%s633_s3 + $0x18] sm:$0xf] %vm343_vm1, %v412_v24  ;;  %v284_v28 = vmax.f32 %v251_v26, 0.0 }
 0x106   :  { %v413_v29 = vpack.c.bf16 %v284_v28, %v284_v28 }
 0x108   :  { %351 = vst.msk [vmem:[%s633_s3 + $0x1c] sm:$0xf] %vm343_vm1, %v413_v29 }

// kernel: cnn_dqn_forward.6
= control target key start
LH: loop header
LB: loop body
LE: loop exit
PB: predicated region body
PF: predicated region fallthrough
CT: control target
= control target key end

     0   :  { %vm361_vm0 = vcmask 523264   ;;  %s878_s1 = inlined_call_operand.vmem [shape: bf16[576,128], index: 1, kind: input, shape index: {}]   ;;  %s879_s0 = inlined_call_operand.vmem [shape: bf16[18,576], index: 0, kind: input, shape index: {}]   ;;  %s880_s2 = inlined_call_operand.vmem [shape: f32[1,128], index: 2, kind: input, shape index: {}]   ;;  %s881_s3 = inlined_call_operand.vmem [shape: bf16[18,128], index: 3, kind: output, shape index: {}]  }
   0x1   :  { %v669_v0 = vld [vmem:[%s878_s1 + $0x78] sm:$0xff]   ;;  %v673_v4 = vld [vmem:[%s878_s1 + $0x70] sm:$0xff]   ;;  %v677_v8 = vld [vmem:[%s878_s1 + $0x68] sm:$0xff]  }
   0x2   :  { %v670_v1 = vld [vmem:[%s878_s1 + $0x38] sm:$0xff]   ;;  %595 = vmatprep.subr.bf16.mxu0 %v669_v0  ;;  %v674_v5 = vld [vmem:[%s878_s1 + $0x30] sm:$0xff]   ;;  %v678_v9 = vld [vmem:[%s878_s1 + $0x28] sm:$0xff]  }
   0x3   :  { %v671_v2 = vld [vmem:[%s878_s1 + $0xf8] sm:$0xff]   ;;  %596 = vmatpush3.bf16.msra.mxu0 %v670_v1  ;;  %v675_v6 = vld [vmem:[%s878_s1 + $0xf0] sm:$0xff]   ;;  %v679_v10 = vld [vmem:[%s878_s1 + $0xe8] sm:$0xff]  }
   0x4   :  { %v672_v3 = vld [vmem:[%s878_s1 + $0xb8] sm:$0xff]   ;;  %623 = vmatprep.subr.bf16.mxu1 %v671_v2  ;;  %597 = vmatprep.subr.bf16.mxu0 %v673_v4  ;;  %v676_v7 = vld [vmem:[%s878_s1 + $0xb0] sm:$0xff]   ;;  %v680_v11 = vld [vmem:[%s878_s1 + $0xa8] sm:$0xff]  }
   0x5   :  { %624 = vmatpush3.bf16.msra.mxu1 %v672_v3  ;;  %v681_v12 = vld [vmem:[%s878_s1 + $0x60] sm:$0xff]   ;;  %v685_v16 = vld [vmem:[%s878_s1 + $0x58] sm:$0xff]   ;;  %v689_v20 = vld [vmem:[%s878_s1 + $0x50] sm:$0xff]  }
   0x6   :  { %625 = vmatprep.subr.bf16.mxu1 %v675_v6  ;;  %v682_v13 = vld [vmem:[%s878_s1 + $0x20] sm:$0xff]   ;;  %v686_v17 = vld [vmem:[%s878_s1 + $0x18] sm:$0xff]   ;;  %v690_v21 = vld [vmem:[%s878_s1 + $0x10] sm:$0xff]  }
   0x7   :  { %598 = vmatpush3.bf16.msra.mxu0 %v674_v5  ;;  %v683_v14 = vld [vmem:[%s878_s1 + $0xe0] sm:$0xff]   ;;  %v687_v18 = vld [vmem:[%s878_s1 + $0xd8] sm:$0xff]   ;;  %v691_v22 = vld [vmem:[%s878_s1 + $0xd0] sm:$0xff]  }
   0x8   :  { %599 = vmatprep.subr.bf16.mxu0 %v677_v8  ;;  %v684_v15 = vld [vmem:[%s878_s1 + $0xa0] sm:$0xff]   ;;  %v688_v19 = vld [vmem:[%s878_s1 + $0x98] sm:$0xff]   ;;  %v692_v23 = vld [vmem:[%s878_s1 + $0x90] sm:$0xff]  }
   0x9   :  { %626 = vmatpush3.bf16.msra.mxu1 %v676_v7  ;;  %v693_v24 = vld [vmem:[%s878_s1 + $0x48] sm:$0xff]   ;;  %v697_v28 = vld [vmem:[%s878_s1 + $0x40] sm:$0xff]   ;;  %v704_v34 = vld [vmem:[%s878_s1 + $0x118] sm:$0xff]  }
   0xa   :  { %627 = vmatprep.subr.bf16.mxu1 %v679_v10  ;;  %v694_v25 = vld [vmem:[%s878_s1 + $0x8] sm:$0xff]   ;;  %v698_v29 = vld [vmem:[%s878_s1] sm:$0xff]   ;;  %v708_v37 = vld [vmem:[%s878_s1 + $0x110] sm:$0xff]  }
   0xb   :  { %600 = vmatpush3.bf16.msra.mxu0 %v678_v9  ;;  %v695_v26 = vld [vmem:[%s878_s1 + $0xc8] sm:$0xff]   ;;  %v699_v30 = vld [vmem:[%s878_s1 + $0xc0] sm:$0xff]   ;;  %v22_v41 = vld [vmem:[%s879_s0 + $0x30] sm:$0x11] }
   0xc   :  { %601 = vmatprep.subr.bf16.mxu0 %v681_v12  ;;  %v696_v27 = vld [vmem:[%s878_s1 + $0x88] sm:$0xff]   ;;  %v700_v31 = vld [vmem:[%s879_s0] ss:$20 sps:$4 sm:$0xff]   ;;  %v702_v32 = vld [vmem:[%s879_s0 + $0x4] ss:$20 sps:$4 sm:$0xff]   ;;  %v544_v43 = vcombine.high %v22_v41, %v22_v41  ;;  %v543_v45 = vcombine.low %v22_v41, %v22_v41 }
   0xd   :  { %628 = vmatpush3.bf16.msra.mxu1 %v680_v11  ;;  %v703_v33 = vld [vmem:[%s878_s1 + $0x80] sm:$0xff]   ;;  %400 = vmatprep.mubr.bf16.mxu0 %v702_v32  ;;  %v705_v35 = vld [vmem:[%s879_s0 + $0x8] ss:$20 sps:$4 sm:$0xff]   ;;  %v716_v47 = vld [vmem:[%s879_s0 + $0x38] ss:$0 sps:$4 sm:$0x11]  }
   0xe   :  { %629 = vmatprep.subr.bf16.mxu1 %v683_v14  ;;  %v707_v36 = vld [vmem:[%s879_s0 + $0xc] ss:$20 sps:$4 sm:$0xff]   ;;  %v715_v44 = vld [vmem:[%s879_s0 + $0x10] ss:$20 sps:$4 sm:$0xff]  }
   0xf   :  { %602 = vmatpush3.bf16.msra.mxu0 %v682_v13  ;;  %v21_v38 = vld [vmem:[%s879_s0 + $0x28] sm:$0x11]  ;;  %448 = vmatprep.mubr.bf16.mxu1 %v707_v36  ;;  %v714_v46 = vld [vmem:[%s878_s1 + $0x100] sm:$0xff]  }
  0x10   :  { %603 = vmatprep.subr.bf16.mxu0 %v685_v16  ;;  %v542_v39 = vcombine.high %v21_v38, %v21_v38  ;;  %v711_v40 = vld [vmem:[%s878_s1 + $0x108] sm:$0xff]   ;;  %v541_v42 = vcombine.low %v21_v38, %v21_v38  ;;  %v535_v60 = vld [vmem:[%s880_s2] ss:$0 sm:$0xff] }
  0x11   :  { %630 = vmatpush3.bf16.msra.mxu1 %v684_v15 }
  0x12   :  { %631 = vmatprep.subr.bf16.mxu1 %v687_v18 }
  0x13   :  { %604 = vmatpush3.bf16.msra.mxu0 %v686_v17 }
  0x14   :  { %605 = vmatprep.subr.bf16.mxu0 %v689_v20 }
  0x15   :  { %632 = vmatpush3.bf16.msra.mxu1 %v688_v19 }
  0x16   :  { %633 = vmatprep.subr.bf16.mxu1 %v691_v22 }
  0x17   :  { %606 = vmatpush3.bf16.msra.mxu0 %v690_v21 }
  0x18   :  { %607 = vmatprep.subr.bf16.mxu0 %v693_v24 }
  0x19   :  { %634 = vmatpush3.bf16.msra.mxu1 %v692_v23 }
  0x1a   :  { %635 = vmatprep.subr.bf16.mxu1 %v695_v26 }
  0x1b   :  { %608 = vmatpush3.bf16.msra.mxu0 %v694_v25 }
  0x1c   :  { %609 = vmatprep.subr.bf16.mxu0 %v697_v28 }
  0x1d   :  { %636 = vmatpush3.bf16.msra.mxu1 %v696_v27 }
  0x1e   :  { %637 = vmatprep.subr.bf16.mxu1 %v699_v30 }
  0x1f   :  { %610 = vmatpush3.bf16.msra.mxu0 %v698_v29 }
  0x20   :  { %657 = vmatprep.subr.bf16.mxu0 %v704_v34 }
  0x21   :  { %638 = vmatpush3.bf16.msra.mxu1 %v703_v33 }
  0x22   :  { %401 = vmatmul.mubr.bf16.vlgmr.msra.gmra.mxu0 %v700_v31 }
  0x23   :  { %658 = vmatpush3.bf16.msra.mxu0 %v704_v34  ;;  %408 = vmatprep.mubr.bf16.mxu0 %v542_v39 }
  0x24   :  { %449 = vmatmul.mubr.bf16.vlgmr.msra.gmra.mxu1 %v705_v35  ;;  %659 = vmatprep.subr.bf16.mxu0 %v708_v37 }
  0x25   :  { %456 = vmatprep.mubr.bf16.mxu1 %v544_v43 }
  0x27   :  { %660 = vmatpush3.bf16.msra.mxu0 %v708_v37 }
  0x28   :  { %661 = vmatprep.subr.bf16.mxu0 %v711_v40 }
  0x2a   :  { %409 = vmatmul.mubr.bf16.gmra.mxu0 %v541_v42 }
  0x2b   :  { %665 = vmatprep.mubr.msk.bf16.mxu0 %vm361_vm0, %v715_v44  ;;  %662 = vmatpush3.bf16.msra.mxu0 %v711_v40 }
  0x2c   :  { %457 = vmatmul.mubr.bf16.gmra.mxu1 %v543_v45  ;;  %663 = vmatprep.subr.bf16.mxu0 %v714_v46 }
  0x2f   :  { %664 = vmatpush3.bf16.msra.mxu0 %v714_v46 }
  0x32   :  { %666 = vmatmul.mubr.msk.bf16.vlgmr.msra.gmra.mxu0 %vm361_vm0, %v716_v47 }
  0xe2   :  { %v611_v48 = vpop.f32.mrf.mxu0 }
  0xe4   :  { %v612_v49 = vpop.f32.mrf.mxu0  ;;  %v639_v50 = vpop.f32.mrf.mxu1 }
  0xe5   :  { %v613_v61 = vadd.f32 %v612_v49, %v611_v48 }
  0xe6   :  { %v614_v51 = vpop.f32.mrf.mxu0  ;;  %v640_v52 = vpop.f32.mrf.mxu1 }
  0xe7   :  { %v403_v5 = vadd.f32 %v613_v61, %v535_v60  ;;  %v641_v6 = vadd.f32 %v640_v52, %v639_v50 }
  0xe8   :  { %v615_v53 = vpop.f32.mrf.mxu0  ;;  %v642_v54 = vpop.f32.mrf.mxu1 }
  0xe9   :  { %v616_v1 = vadd.f32 %v615_v53, %v614_v51  ;;  %v451_v15 = vadd.f32 %v641_v6, %v403_v5 }
  0xea   :  { %v617_v55 = vpop.f32.mrf.mxu0  ;;  %v643_v56 = vpop.f32.mrf.mxu1 }
  0xeb   :  { %v406_v10 = vadd.f32 %v616_v1, %v535_v60  ;;  %v644_v11 = vadd.f32 %v643_v56, %v642_v54 }
  0xec   :  { %v618_v57 = vpop.f32.mrf.mxu0  ;;  %v645_v59 = vpop.f32.mrf.mxu1 }
  0xed   :  { %v619_v58 = vadd.f32 %v618_v57, %v617_v55  ;;  %v454_v19 = vadd.f32 %v644_v11, %v406_v10 }
  0xee   :  { %v620_v62 = vpop.f32.mrf.mxu0  ;;  %v646_v0 = vpop.f32.mrf.mxu1 }
  0xef   :  { %v411_v63 = vadd.f32 %v619_v58, %v535_v60  ;;  %v647_v2 = vadd.f32 %v646_v0, %v645_v59 }
  0xf0   :  { %v621_v3 = vpop.f32.mrf.mxu0  ;;  %v648_v4 = vpop.f32.mrf.mxu1 }
  0xf1   :  { %v459_v7 = vadd.f32 %v647_v2, %v411_v63 }
  0xf2   :  { %v667_v8 = vpop.f32.mrf.mxu0  ;;  %v649_v9 = vpop.f32.mrf.mxu1 }
  0xf3   :  { %v507_v12 = vadd.f32 %v667_v8, %v459_v7 }
  0xf4   :  { %v498_v13 = vpop.f32.mrf.mxu0 }
  0xf5   :  { %v514_v14 = vmax.f32 %v507_v12, 0.0  ;;  %v499_v18 = vadd.f32 %v498_v13, %v451_v15 }
  0xf6   :  { %v668_v16 = vpop.f32.mrf.mxu0 }
  0xf7   :  { %v589_v17 = vpack.c.bf16 %v514_v14, %v514_v14  ;;  %v512_v22 = vmax.f32 %v499_v18, 0.0 }
  0xf8   :  { %v501_v20 = vpop.f32.mrf.mxu0 }
  0xf9   :  { %530 = vst [vmem:[%s881_s3 + $0x8] sm:$0x1] %v589_v17  ;;  %v502_v21 = vadd.f32 %v501_v20, %v454_v19 }
  0xfb   :  { %v513_v23 = vmax.f32 %v502_v21, 0.0 }
  0xfd   :  { %v593_v24 = vpack.c.bf16 %v513_v23, %v512_v22 }
  0xff   :  { %594 = vst [vmem:[%s881_s3] sm:$0xff] %v593_v24  }

// kernel: cnn_dqn_forward.7
= control target key start
LH: loop header
LB: loop body
LE: loop exit
PB: predicated region body
PF: predicated region fallthrough
CT: control target
= control target key end

     0   :  { %v194_v35 = vlaneseq  ;;  %v3408_v36 = vmov 1966171168   ;;  %s4455_s0 = inlined_call_operand.vmem [shape: bf16[2,1152], index: 0, kind: input, shape index: {}]   ;;  %s4456_s1 = inlined_call_operand.vmem [shape: bf16[1152,256], index: 1, kind: input, shape index: {}]   ;;  %s4457_s2 = inlined_call_operand.vmem [shape: f32[1,256], index: 2, kind: input, shape index: {}]   ;;  %s4458_s3 = inlined_call_operand.vmem [shape: bf16[256,512], index: 3, kind: input, shape index: {}]   ;;  %s4459_s4 = inlined_call_operand.vmem [shape: f32[1,512], index: 4, kind: input, shape index: {}]   ;;  %s4460_s5 = inlined_call_operand.vmem [shape: bf16[512,256], index: 5, kind: input, shape index: {}]   ;;  %s4461_s6 = inlined_call_operand.vmem [shape: f32[1,256], index: 6, kind: input, shape index: {}]   ;;  %s4462_s7 = inlined_call_operand.vmem [shape: bf16[256,128], index: 7, kind: input, shape index: {}]   ;;  %s4463_s8 = inlined_call_operand.vmem [shape: f32[1,128], index: 8, kind: input, shape index: {}]   ;;  %s4464_s9 = inlined_call_operand.vmem [shape: bf16[128,64], index: 9, kind: input, shape index: {}]   ;;  %s4465_s10 = inlined_call_operand.vmem [shape: f32[1,64], index: 10, kind: input, shape index: {}]   ;;  %s4466_s11 = inlined_call_operand.vmem [shape: bf16[64,128], index: 11, kind: input, shape index: {}]   ;;  %s4467_s12 = inlined_call_operand.vmem [shape: f32[1,128], index: 12, kind: input, shape index: {}]   ;;  %s4468_s13 = inlined_call_operand.hbm [shape: f32[2,128], index: 13, kind: output, shape index: {}]  }
   0x1   :  { %v2949_v0 = vld [vmem:[%s4456_s1 + $0x74] ss:$8 sps:$4 sm:$0xff]   ;;  %v2951_v1 = vld [vmem:[%s4456_s1 + $0x70] ss:$8 sps:$4 sm:$0xff]   ;;  %v2955_v4 = vld [vmem:[%s4456_s1 + $0x64] ss:$8 sps:$4 sm:$0xff]   ;;  %v208_v37 = vunpack.c.l.s4 %v3408_v36 }
   0x2   :  { %998 = vmatprep.subr.bf16.mxu0 %v2949_v0  ;;  %v2952_v2 = vld [vmem:[%s4456_s1 + $0x174] ss:$8 sps:$4 sm:$0xff]   ;;  %v2954_v3 = vld [vmem:[%s4456_s1 + $0x170] ss:$8 sps:$4 sm:$0xff]   ;;  %v2957_v5 = vld [vmem:[%s4456_s1 + $0x60] ss:$8 sps:$4 sm:$0xff]  }
   0x3   :  { %999 = vmatpush1.bf16.msra.mxu0 %v2951_v1  ;;  %1039 = vmatprep.subr.bf16.mxu1 %v2952_v2  ;;  %v2958_v6 = vld [vmem:[%s4456_s1 + $0x164] ss:$8 sps:$4 sm:$0xff]   ;;  %v2960_v7 = vld [vmem:[%s4456_s1 + $0x160] ss:$8 sps:$4 sm:$0xff]   ;;  %v2961_v8 = vld [vmem:[%s4456_s1 + $0x54] ss:$8 sps:$4 sm:$0xff]   ;;  %v209_v43 = vunpack.c.0.s8 %v208_v37 }
   0x4   :  { %1040 = vmatpush1.bf16.msra.mxu1 %v2954_v3  ;;  %1000 = vmatprep.subr.bf16.mxu0 %v2955_v4  ;;  %v2963_v9 = vld [vmem:[%s4456_s1 + $0x50] ss:$8 sps:$4 sm:$0xff]   ;;  %v2964_v10 = vld [vmem:[%s4456_s1 + $0x154] ss:$8 sps:$4 sm:$0xff]   ;;  %v2967_v11 = vld [vmem:[%s4456_s1 + $0x44] ss:$8 sps:$4 sm:$0xff]  }
   0x5   :  { %1041 = vmatprep.subr.bf16.mxu1 %v2958_v6  ;;  %v2966_v12 = vld [vmem:[%s4456_s1 + $0x150] ss:$8 sps:$4 sm:$0xff]   ;;  %v2970_v13 = vld [vmem:[%s4456_s1 + $0x144] ss:$8 sps:$4 sm:$0xff]   ;;  %v2969_v14 = vld [vmem:[%s4456_s1 + $0x40] ss:$8 sps:$4 sm:$0xff]  }
   0x6   :  { %v2973_v15 = vld [vmem:[%s4456_s1 + $0x34] ss:$8 sps:$4 sm:$0xff]   ;;  %v2972_v16 = vld [vmem:[%s4456_s1 + $0x140] ss:$8 sps:$4 sm:$0xff]   ;;  %v2975_v18 = vld [vmem:[%s4456_s1 + $0x30] ss:$8 sps:$4 sm:$0xff]  }
   0x7   :  { %1001 = vmatpush1.bf16.msra.mxu0 %v2957_v5  ;;  %v2976_v17 = vld [vmem:[%s4456_s1 + $0x134] ss:$8 sps:$4 sm:$0xff]   ;;  %v2979_v19 = vld [vmem:[%s4456_s1 + $0x24] ss:$8 sps:$4 sm:$0xff]   ;;  %v2978_v20 = vld [vmem:[%s4456_s1 + $0x130] ss:$8 sps:$4 sm:$0xff]  }
   0x8   :  { %1002 = vmatprep.subr.bf16.mxu0 %v2961_v8  ;;  %1042 = vmatpush1.bf16.msra.mxu1 %v2960_v7  ;;  %v2982_v21 = vld [vmem:[%s4456_s1 + $0x124] ss:$8 sps:$4 sm:$0xff]   ;;  %v2981_v22 = vld [vmem:[%s4456_s1 + $0x20] ss:$8 sps:$4 sm:$0xff]   ;;  %v2985_v23 = vld [vmem:[%s4456_s1 + $0x14] ss:$8 sps:$4 sm:$0xff]  }
   0x9   :  { %1043 = vmatprep.subr.bf16.mxu1 %v2964_v10  ;;  %v2984_v24 = vld [vmem:[%s4456_s1 + $0x120] ss:$8 sps:$4 sm:$0xff]   ;;  %v2988_v25 = vld [vmem:[%s4456_s1 + $0x114] ss:$8 sps:$4 sm:$0xff]   ;;  %v2987_v26 = vld [vmem:[%s4456_s1 + $0x10] ss:$8 sps:$4 sm:$0xff]  }
   0xa   :  { %v2991_v27 = vld [vmem:[%s4456_s1 + $0x4] ss:$8 sps:$4 sm:$0xff]   ;;  %v2990_v28 = vld [vmem:[%s4456_s1 + $0x110] ss:$8 sps:$4 sm:$0xff]   ;;  %v2993_v30 = vld [vmem:[%s4456_s1] ss:$8 sps:$4 sm:$0xff]  }
   0xb   :  { %1003 = vmatpush1.bf16.msra.mxu0 %v2963_v9  ;;  %v2994_v29 = vld [vmem:[%s4456_s1 + $0x104] ss:$8 sps:$4 sm:$0xff]   ;;  %v2997_v31 = vld [vmem:[%s4456_s1 + $0xf4] ss:$8 sps:$4 sm:$0xff]   ;;  %v2996_v32 = vld [vmem:[%s4456_s1 + $0x100] ss:$8 sps:$4 sm:$0xff]  }
   0xc   :  { %1004 = vmatprep.subr.bf16.mxu0 %v2967_v11  ;;  %1044 = vmatpush1.bf16.msra.mxu1 %v2966_v12  ;;  %v3000_v33 = vld [vmem:[%s4456_s1 + $0x1f4] ss:$8 sps:$4 sm:$0xff]   ;;  %v2999_v34 = vld [vmem:[%s4456_s1 + $0xf0] ss:$8 sps:$4 sm:$0xff]   ;;  %v3003_v38 = vld [vmem:[%s4456_s1 + $0xe4] ss:$8 sps:$4 sm:$0xff]  }
   0xd   :  { %1045 = vmatprep.subr.bf16.mxu1 %v2970_v13  ;;  %v3002_v39 = vld [vmem:[%s4456_s1 + $0x1f0] ss:$8 sps:$4 sm:$0xff]   ;;  %v3006_v40 = vld [vmem:[%s4456_s1 + $0x1e4] ss:$8 sps:$4 sm:$0xff]   ;;  %v3005_v41 = vld [vmem:[%s4456_s1 + $0xe0] ss:$8 sps:$4 sm:$0xff]  }
   0xe   :  { %v3600_v42 = vshrl.u32 %v194_v35, 7  ;;  %v3009_v44 = vld [vmem:[%s4456_s1 + $0xd4] ss:$8 sps:$4 sm:$0xff]   ;;  %v3008_v45 = vld [vmem:[%s4456_s1 + $0x1e0] ss:$8 sps:$4 sm:$0xff]  }
   0xf   :  { %1005 = vmatpush1.bf16.msra.mxu0 %v2969_v14  ;;  %v3012_v46 = vld [vmem:[%s4456_s1 + $0x1d4] ss:$8 sps:$4 sm:$0xff]   ;;  %v3011_v47 = vld [vmem:[%s4456_s1 + $0xd0] ss:$8 sps:$4 sm:$0xff]   ;;  %v3015_v49 = vld [vmem:[%s4456_s1 + $0xc4] ss:$8 sps:$4 sm:$0xff]  }
  0x10   :  { %1006 = vmatprep.subr.bf16.mxu0 %v2973_v15  ;;  %1046 = vmatpush1.bf16.msra.mxu1 %v2972_v16  ;;  %v3615_v48 = vsub.s32 %v209_v43, %v3600_v42  ;;  %v3014_v50 = vld [vmem:[%s4456_s1 + $0x1d0] ss:$8 sps:$4 sm:$0xff]   ;;  %v3018_v51 = vld [vmem:[%s4456_s1 + $0x1c4] ss:$8 sps:$4 sm:$0xff]   ;;  %v3017_v53 = vld [vmem:[%s4456_s1 + $0xc0] ss:$8 sps:$4 sm:$0xff]  }
  0x11   :  { %1047 = vmatprep.subr.bf16.mxu1 %v2976_v17  ;;  %v46_v52 = vld [vmem:[%s4455_s0] sm:$0xff]  ;;  %v3021_v56 = vld [vmem:[%s4456_s1 + $0xb4] ss:$8 sps:$4 sm:$0xff]   ;;  %v3023_v61 = vld [vmem:[%s4456_s1 + $0xb0] ss:$8 sps:$4 sm:$0xff]  }
  0x12   :  { %v206_v54 = vcombine.high %v46_v52, %v46_v52  ;;  %v213_v55 = vrot.slane %v46_v52, %v3615_v48  ;;  %v3020_v57 = vld [vmem:[%s4456_s1 + $0x1c0] ss:$8 sps:$4 sm:$0xff]   ;;  %v3024_v60 = vld [vmem:[%s4456_s1 + $0x1b4] ss:$8 sps:$4 sm:$0xff]   ;;  %v3027_v0 = vld [vmem:[%s4456_s1 + $0xa4] ss:$8 sps:$4 sm:$0xff]  }
  0x13   :  { %1007 = vmatpush1.bf16.msra.mxu0 %v2975_v18  ;;  %v3026_v1 = vld [vmem:[%s4456_s1 + $0x1b0] ss:$8 sps:$4 sm:$0xff]   ;;  %v3030_v3 = vld [vmem:[%s4456_s1 + $0x1a4] ss:$8 sps:$4 sm:$0xff]   ;;  %v3029_v4 = vld [vmem:[%s4456_s1 + $0xa0] ss:$8 sps:$4 sm:$0xff]  }
  0x14   :  { %1008 = vmatprep.subr.bf16.mxu0 %v2979_v19  ;;  %1048 = vmatpush1.bf16.msra.mxu1 %v2978_v20  ;;  %v221_v58 = vcombine.high %v213_v55, %v213_v55  ;;  %v220_v59 = vrot.slane %v206_v54, %v3615_v48  ;;  %v3033_v5 = vld [vmem:[%s4456_s1 + $0x94] ss:$8 sps:$4 sm:$0xff]   ;;  %v3032_v6 = vld [vmem:[%s4456_s1 + $0x1a0] ss:$8 sps:$4 sm:$0xff]   ;;  %v3035_v8 = vld [vmem:[%s4456_s1 + $0x90] ss:$8 sps:$4 sm:$0xff]   ;;  %v229_v14 = vrot.slane %v213_v55, %v3615_v48 }
  0x15   :  { %1049 = vmatprep.subr.bf16.mxu1 %v2982_v21  ;;  %v3036_v7 = vld [vmem:[%s4456_s1 + $0x194] ss:$8 sps:$4 sm:$0xff]   ;;  %v3039_v9 = vld [vmem:[%s4456_s1 + $0x84] ss:$8 sps:$4 sm:$0xff]   ;;  %v3038_v10 = vld [vmem:[%s4456_s1 + $0x190] ss:$8 sps:$4 sm:$0xff]  }
  0x16   :  { %v243_v62 = vrot.slane %v221_v58, %v3615_v48  ;;  %v3648_v63 = vrot.slane %v220_v59, %v3615_v48  ;;  %v222_v11 = vcombine.high %v220_v59, %v220_v59  ;;  %v3042_v12 = vld [vmem:[%s4456_s1 + $0x184] ss:$8 sps:$4 sm:$0xff]   ;;  %v3041_v13 = vld [vmem:[%s4456_s1 + $0x80] ss:$8 sps:$4 sm:$0xff]   ;;  %v3048_v15 = vld [vmem:[%s4456_s1 + $0x274] ss:$8 sps:$4 sm:$0xff]   ;;  %v251_v20 = vcombine.high %v229_v14, %v229_v14 }
  0x17   :  { %1009 = vmatpush1.bf16.msra.mxu0 %v2981_v22  ;;  %v3045_v16 = vld [vmem:[%s4456_s1 + $0x180] ss:$8 sps:$4 sm:$0xff]   ;;  %v3051_v18 = vld [vmem:[%s4456_s1 + $0x374] ss:$8 sps:$4 sm:$0xff]   ;;  %v3046_v19 = vld [vmem:[%s4456_s1 + $0x270] ss:$8 sps:$4 sm:$0xff]  }
  0x18   :  { %1010 = vmatprep.subr.bf16.mxu0 %v2985_v23  ;;  %1050 = vmatpush1.bf16.msra.mxu1 %v2984_v24  ;;  %v253_v2 = vcombine.high %v243_v62, %v243_v62  ;;  %v250_v17 = vrot.slane %v222_v11, %v3615_v48  ;;  %v3054_v21 = vld [vmem:[%s4456_s1 + $0x264] ss:$8 sps:$4 sm:$0xff]   ;;  %v3049_v22 = vld [vmem:[%s4456_s1 + $0x370] ss:$8 sps:$4 sm:$0xff]   ;;  %v3067_v35 = vld [vmem:[%s4456_s1 + $0x340] ss:$8 sps:$4 sm:$0xff]  }
  0x19   :  { %1051 = vmatprep.subr.bf16.mxu1 %v2988_v25  ;;  %1030 = vmatprep.mubr.bf16.mxu0 %v243_v62  ;;  %v3057_v24 = vld [vmem:[%s4456_s1 + $0x364] ss:$8 sps:$4 sm:$0xff]   ;;  %v3052_v25 = vld [vmem:[%s4456_s1 + $0x260] ss:$8 sps:$4 sm:$0xff]   ;;  %v3075_v36 = vld [vmem:[%s4456_s1 + $0x334] ss:$8 sps:$4 sm:$0xff]  }
  0x1a   :  { %1071 = vmatprep.mubr.bf16.mxu1 %v253_v2  ;;  %v254_v23 = vcombine.high %v250_v17, %v250_v17  ;;  %v3070_v37 = vld [vmem:[%s4456_s1 + $0x230] ss:$8 sps:$4 sm:$0xff]   ;;  %v3084_v43 = vld [vmem:[%s4456_s1 + $0x214] ss:$8 sps:$4 sm:$0xff]   ;;  %v3100_v58 = vld [vmem:[%s4456_s1 + $0x2e0] ss:$8 sps:$4 sm:$0xff]  }
  0x1b   :  { %1011 = vmatpush1.bf16.msra.mxu0 %v2987_v26  ;;  %v3060_v26 = vld [vmem:[%s4456_s1 + $0x254] ss:$8 sps:$4 sm:$0xff]   ;;  %v3094_v55 = vld [vmem:[%s4456_s1 + $0x2f0] ss:$8 sps:$4 sm:$0xff]   ;;  %v3105_v59 = vld [vmem:[%s4456_s1 + $0x3e4] ss:$8 sps:$4 sm:$0xff]  }
  0x1c   :  { %1012 = vmatprep.subr.bf16.mxu0 %v2991_v27  ;;  %1052 = vmatpush1.bf16.msra.mxu1 %v2990_v28  ;;  %v3055_v27 = vld [vmem:[%s4456_s1 + $0x360] ss:$8 sps:$4 sm:$0xff]   ;;  %v3063_v28 = vld [vmem:[%s4456_s1 + $0x354] ss:$8 sps:$4 sm:$0xff]   ;;  %v3109_v2 = vld [vmem:[%s4456_s1 + $0x3d0] ss:$8 sps:$4 sm:$0xff]  }
  0x1d   :  { %1053 = vmatprep.subr.bf16.mxu1 %v2994_v29  ;;  %v3058_v29 = vld [vmem:[%s4456_s1 + $0x250] ss:$8 sps:$4 sm:$0xff]   ;;  %v3096_v52 = vld [vmem:[%s4456_s1 + $0x2f4] ss:$8 sps:$4 sm:$0xff]   ;;  %v3129_v11 = vld [vmem:[%s4456_s1 + $0x3a4] ss:$8 sps:$4 sm:$0xff]  }
  0x1e   :  { %v3099_v54 = vld [vmem:[%s4456_s1 + $0x3f4] ss:$8 sps:$4 sm:$0xff]  }
  0x1f   :  { %1013 = vmatpush1.bf16.msra.mxu0 %v2993_v30  ;;  %v3066_v30 = vld [vmem:[%s4456_s1 + $0x244] ss:$8 sps:$4 sm:$0xff]   ;;  %v3111_v62 = vld [vmem:[%s4456_s1 + $0x3d4] ss:$8 sps:$4 sm:$0xff]  }
  0x20   :  { %1014 = vmatprep.subr.bf16.mxu0 %v2997_v31  ;;  %1054 = vmatpush1.bf16.msra.mxu1 %v2996_v32  ;;  %v3061_v31 = vld [vmem:[%s4456_s1 + $0x350] ss:$8 sps:$4 sm:$0xff]   ;;  %v3069_v32 = vld [vmem:[%s4456_s1 + $0x344] ss:$8 sps:$4 sm:$0xff]  }
  0x21   :  { %1055 = vmatprep.subr.bf16.mxu1 %v3000_v33  ;;  %v3064_v33 = vld [vmem:[%s4456_s1 + $0x240] ss:$8 sps:$4 sm:$0xff]  }
  0x23   :  { %1015 = vmatpush2.bf16.msra.mxu0 %v2999_v34  ;;  %v3072_v34 = vld [vmem:[%s4456_s1 + $0x234] ss:$8 sps:$4 sm:$0xff]  }
  0x24   :  { %1016 = vmatprep.subr.bf16.mxu0 %v3003_v38  ;;  %1056 = vmatpush2.bf16.msra.mxu1 %v3002_v39  ;;  %v3078_v38 = vld [vmem:[%s4456_s1 + $0x224] ss:$8 sps:$4 sm:$0xff]   ;;  %v3073_v39 = vld [vmem:[%s4456_s1 + $0x330] ss:$8 sps:$4 sm:$0xff]  }
  0x25   :  { %1057 = vmatprep.subr.bf16.mxu1 %v3006_v40  ;;  %v3081_v40 = vld [vmem:[%s4456_s1 + $0x324] ss:$8 sps:$4 sm:$0xff]  }
  0x27   :  { %1017 = vmatpush2.bf16.msra.mxu0 %v3005_v41  ;;  %v3076_v41 = vld [vmem:[%s4456_s1 + $0x220] ss:$8 sps:$4 sm:$0xff]  }
  0x28   :  { %1018 = vmatprep.subr.bf16.mxu0 %v3009_v44  ;;  %1058 = vmatpush2.bf16.msra.mxu1 %v3008_v45  ;;  %v3079_v44 = vld [vmem:[%s4456_s1 + $0x320] ss:$8 sps:$4 sm:$0xff]   ;;  %v3087_v45 = vld [vmem:[%s4456_s1 + $0x314] ss:$8 sps:$4 sm:$0xff]  }
  0x29   :  { %1059 = vmatprep.subr.bf16.mxu1 %v3012_v46  ;;  %v3082_v46 = vld [vmem:[%s4456_s1 + $0x210] ss:$8 sps:$4 sm:$0xff]  }
  0x2b   :  { %1019 = vmatpush2.bf16.msra.mxu0 %v3011_v47  ;;  %v3090_v47 = vld [vmem:[%s4456_s1 + $0x204] ss:$8 sps:$4 sm:$0xff]  }
  0x2c   :  { %1020 = vmatprep.subr.bf16.mxu0 %v3015_v49  ;;  %1060 = vmatpush2.bf16.msra.mxu1 %v3014_v50  ;;  %v3085_v49 = vld [vmem:[%s4456_s1 + $0x310] ss:$8 sps:$4 sm:$0xff]   ;;  %v3093_v50 = vld [vmem:[%s4456_s1 + $0x304] ss:$8 sps:$4 sm:$0xff]  }
  0x2d   :  { %1061 = vmatprep.subr.bf16.mxu1 %v3018_v51  ;;  %v3088_v51 = vld [vmem:[%s4456_s1 + $0x200] ss:$8 sps:$4 sm:$0xff]  }
  0x2f   :  { %1021 = vmatpush2.bf16.msra.mxu0 %v3017_v53  ;;  %v3091_v53 = vld [vmem:[%s4456_s1 + $0x300] ss:$8 sps:$4 sm:$0xff]  }
  0x30   :  { %1022 = vmatprep.subr.bf16.mxu0 %v3021_v56  ;;  %1062 = vmatpush2.bf16.msra.mxu1 %v3020_v57  ;;  %v3097_v56 = vld [vmem:[%s4456_s1 + $0x3f0] ss:$8 sps:$4 sm:$0xff]   ;;  %v3102_v57 = vld [vmem:[%s4456_s1 + $0x2e4] ss:$8 sps:$4 sm:$0xff]  }
  0x31   :  { %1063 = vmatprep.subr.bf16.mxu1 %v3024_v60  ;;  %v3108_v60 = vld [vmem:[%s4456_s1 + $0x2d4] ss:$8 sps:$4 sm:$0xff]  }
  0x33   :  { %1023 = vmatpush2.bf16.msra.mxu0 %v3023_v61  ;;  %v3103_v61 = vld [vmem:[%s4456_s1 + $0x3e0] ss:$8 sps:$4 sm:$0xff]  }
  0x34   :  { %1024 = vmatprep.subr.bf16.mxu0 %v3027_v0  ;;  %1064 = vmatpush2.bf16.msra.mxu1 %v3026_v1  ;;  %v3106_v0 = vld [vmem:[%s4456_s1 + $0x2d0] ss:$8 sps:$4 sm:$0xff]   ;;  %v3114_v1 = vld [vmem:[%s4456_s1 + $0x2c4] ss:$8 sps:$4 sm:$0xff]  }
  0x35   :  { %1065 = vmatprep.subr.bf16.mxu1 %v3030_v3  ;;  %v3117_v3 = vld [vmem:[%s4456_s1 + $0x3c4] ss:$8 sps:$4 sm:$0xff]  }
  0x37   :  { %1025 = vmatpush2.bf16.msra.mxu0 %v3029_v4  ;;  %v3112_v4 = vld [vmem:[%s4456_s1 + $0x2c0] ss:$8 sps:$4 sm:$0xff]  }
  0x38   :  { %1026 = vmatprep.subr.bf16.mxu0 %v3033_v5  ;;  %1066 = vmatpush2.bf16.msra.mxu1 %v3032_v6  ;;  %v3120_v5 = vld [vmem:[%s4456_s1 + $0x2b4] ss:$8 sps:$4 sm:$0xff]   ;;  %v3115_v6 = vld [vmem:[%s4456_s1 + $0x3c0] ss:$8 sps:$4 sm:$0xff]  }
  0x39   :  { %1067 = vmatprep.subr.bf16.mxu1 %v3036_v7  ;;  %v3123_v7 = vld [vmem:[%s4456_s1 + $0x3b4] ss:$8 sps:$4 sm:$0xff]  }
  0x3b   :  { %1027 = vmatpush2.bf16.msra.mxu0 %v3035_v8  ;;  %v3118_v8 = vld [vmem:[%s4456_s1 + $0x2b0] ss:$8 sps:$4 sm:$0xff]  }
  0x3c   :  { %1028 = vmatprep.subr.bf16.mxu0 %v3039_v9  ;;  %1068 = vmatpush2.bf16.msra.mxu1 %v3038_v10  ;;  %v3126_v9 = vld [vmem:[%s4456_s1 + $0x2a4] ss:$8 sps:$4 sm:$0xff]   ;;  %v3121_v10 = vld [vmem:[%s4456_s1 + $0x3b0] ss:$8 sps:$4 sm:$0xff]  }
  0x3d   :  { %1069 = vmatprep.subr.bf16.mxu1 %v3042_v12  ;;  %v3124_v12 = vld [vmem:[%s4456_s1 + $0x2a0] ss:$8 sps:$4 sm:$0xff]  }
  0x3f   :  { %1029 = vmatpush2.bf16.msra.mxu0 %v3041_v13  ;;  %v3132_v13 = vld [vmem:[%s4456_s1 + $0x294] ss:$8 sps:$4 sm:$0xff]  }
  0x40   :  { %1080 = vmatprep.subr.bf16.mxu0 %v3048_v15  ;;  %1070 = vmatpush2.bf16.msra.mxu1 %v3045_v16  ;;  %v3135_v15 = vld [vmem:[%s4456_s1 + $0x394] ss:$8 sps:$4 sm:$0xff]   ;;  %v3130_v16 = vld [vmem:[%s4456_s1 + $0x290] ss:$8 sps:$4 sm:$0xff]  }
  0x41   :  { %1121 = vmatprep.subr.bf16.mxu1 %v3051_v18  ;;  %v3133_v18 = vld [vmem:[%s4456_s1 + $0x390] ss:$8 sps:$4 sm:$0xff]  }
  0x42   :  { %1031 = vmatmul.mubr.bf16.vlgmr.msra.gmra.mxu0 %v229_v14  ;;  %v3127_v14 = vld [vmem:[%s4456_s1 + $0x3a0] ss:$8 sps:$4 sm:$0xff]  }
  0x43   :  { %1081 = vmatpush1.bf16.msra.mxu0 %v3046_v19  ;;  %1112 = vmatprep.mubr.bf16.mxu0 %v250_v17  ;;  %v3138_v17 = vld [vmem:[%s4456_s1 + $0x284] ss:$8 sps:$4 sm:$0xff]  }
  0x44   :  { %1072 = vmatmul.mubr.bf16.vlgmr.msra.gmra.mxu1 %v251_v20  ;;  %1082 = vmatprep.subr.bf16.mxu0 %v3054_v21  ;;  %v3141_v19 = vld [vmem:[%s4456_s1 + $0x384] ss:$8 sps:$4 sm:$0xff]   ;;  %v3136_v20 = vld [vmem:[%s4456_s1 + $0x280] ss:$8 sps:$4 sm:$0xff]   ;;  %v3144_v21 = vld [vmem:[%s4456_s1 + $0x474] ss:$8 sps:$4 sm:$0xff]  }
  0x45   :  { %1122 = vmatpush1.bf16.msra.mxu1 %v3049_v22  ;;  %1153 = vmatprep.mubr.bf16.mxu1 %v254_v23  ;;  %v3139_v22 = vld [vmem:[%s4456_s1 + $0x380] ss:$8 sps:$4 sm:$0xff]   ;;  %v3142_v23 = vld [vmem:[%s4456_s1 + $0x470] ss:$8 sps:$4 sm:$0xff]  }
  0x46   :  { %1123 = vmatprep.subr.bf16.mxu1 %v3057_v24  ;;  %v3147_v24 = vld [vmem:[%s4456_s1 + $0x464] ss:$8 sps:$4 sm:$0xff]  }
  0x47   :  { %1083 = vmatpush1.bf16.msra.mxu0 %v3052_v25  ;;  %v252_v25 = vcombine.high %v3648_v63, %v3648_v63 }
  0x48   :  { %1084 = vmatprep.subr.bf16.mxu0 %v3060_v26  ;;  %v3145_v26 = vld [vmem:[%s4456_s1 + $0x460] ss:$8 sps:$4 sm:$0xff]  }
  0x49   :  { %1124 = vmatpush1.bf16.msra.mxu1 %v3055_v27  ;;  %v3150_v27 = vld [vmem:[%s4456_s1 + $0x454] ss:$8 sps:$4 sm:$0xff]  }
  0x4a   :  { %1125 = vmatprep.subr.bf16.mxu1 %v3063_v28  ;;  %v3409_v28 = vmov 0  }
  0x4b   :  { %1085 = vmatpush1.bf16.msra.mxu0 %v3058_v29  ;;  %v3148_v29 = vld [vmem:[%s4456_s1 + $0x450] ss:$8 sps:$4 sm:$0xff]  }
  0x4c   :  { %1086 = vmatprep.subr.bf16.mxu0 %v3066_v30  ;;  %v3153_v30 = vld [vmem:[%s4456_s1 + $0x444] ss:$8 sps:$4 sm:$0xff]  }
  0x4d   :  { %1126 = vmatpush1.bf16.msra.mxu1 %v3061_v31  ;;  %v3168_v31 = vld [vmem:[%s4458_s3 + $0xe4] ss:$16 sps:$4 sm:$0xff]  }
  0x4e   :  { %1127 = vmatprep.subr.bf16.mxu1 %v3069_v32  ;;  %v3151_v32 = vld [vmem:[%s4456_s1 + $0x440] ss:$8 sps:$4 sm:$0xff]  }
  0x4f   :  { %1087 = vmatpush1.bf16.msra.mxu0 %v3064_v33  ;;  %v3174_v33 = vld [vmem:[%s4458_s3 + $0xc4] ss:$16 sps:$4 sm:$0xff]  }
  0x50   :  { %1088 = vmatprep.subr.bf16.mxu0 %v3072_v34  ;;  %v3156_v34 = vld [vmem:[%s4456_s1 + $0x434] ss:$8 sps:$4 sm:$0xff]  }
  0x51   :  { %1128 = vmatpush1.bf16.msra.mxu1 %v3067_v35  ;;  %v3172_v35 = vld [vmem:[%s4458_s3 + $0xc0] ss:$16 sps:$4 sm:$0xff]  }
  0x52   :  { %1129 = vmatprep.subr.bf16.mxu1 %v3075_v36  ;;  %v3180_v36 = vld [vmem:[%s4458_s3 + $0xa4] ss:$16 sps:$4 sm:$0xff]  }
  0x53   :  { %1089 = vmatpush1.bf16.msra.mxu0 %v3070_v37  ;;  %v3154_v37 = vld [vmem:[%s4456_s1 + $0x430] ss:$8 sps:$4 sm:$0xff]  }
  0x54   :  { %1090 = vmatprep.subr.bf16.mxu0 %v3078_v38  ;;  %v3159_v38 = vld [vmem:[%s4456_s1 + $0x424] ss:$8 sps:$4 sm:$0xff]  }
  0x55   :  { %1130 = vmatpush1.bf16.msra.mxu1 %v3073_v39  ;;  %v3157_v39 = vld [vmem:[%s4456_s1 + $0x420] ss:$8 sps:$4 sm:$0xff]  }
  0x56   :  { %1131 = vmatprep.subr.bf16.mxu1 %v3081_v40  ;;  %v3178_v40 = vld [vmem:[%s4458_s3 + $0xa0] ss:$16 sps:$4 sm:$0xff]  }
  0x57   :  { %1091 = vmatpush1.bf16.msra.mxu0 %v3076_v41  ;;  %v3186_v41 = vld [vmem:[%s4458_s3 + $0x84] ss:$16 sps:$4 sm:$0xff]  }
  0x58   :  { %1092 = vmatprep.subr.bf16.mxu0 %v3084_v43  ;;  %v3162_v43 = vld [vmem:[%s4456_s1 + $0x414] ss:$8 sps:$4 sm:$0xff]  }
  0x59   :  { %1132 = vmatpush1.bf16.msra.mxu1 %v3079_v44  ;;  %v3184_v44 = vld [vmem:[%s4458_s3 + $0x80] ss:$16 sps:$4 sm:$0xff]  }
  0x5a   :  { %1133 = vmatprep.subr.bf16.mxu1 %v3087_v45  ;;  %v3192_v45 = vld [vmem:[%s4458_s3 + $0x64] ss:$16 sps:$4 sm:$0xff]  }
  0x5b   :  { %1093 = vmatpush1.bf16.msra.mxu0 %v3082_v46  ;;  %v3160_v46 = vld [vmem:[%s4456_s1 + $0x410] ss:$8 sps:$4 sm:$0xff]  }
  0x5c   :  { %1094 = vmatprep.subr.bf16.mxu0 %v3090_v47  ;;  %v3165_v47 = vld [vmem:[%s4456_s1 + $0x404] ss:$8 sps:$4 sm:$0xff]  }
  0x5d   :  { %1134 = vmatpush1.bf16.msra.mxu1 %v3085_v49  ;;  %v3190_v49 = vld [vmem:[%s4458_s3 + $0x60] ss:$16 sps:$4 sm:$0xff]  }
  0x5e   :  { %1135 = vmatprep.subr.bf16.mxu1 %v3093_v50  ;;  %v3198_v50 = vld [vmem:[%s4458_s3 + $0x44] ss:$16 sps:$4 sm:$0xff]  }
  0x5f   :  { %1095 = vmatpush1.bf16.msra.mxu0 %v3088_v51  ;;  %v3163_v51 = vld [vmem:[%s4456_s1 + $0x400] ss:$8 sps:$4 sm:$0xff]  }
  0x60   :  { %1096 = vmatprep.subr.bf16.mxu0 %v3096_v52  ;;  %v2571_v52 = vld.sshfl [vmem:[%s4455_s0 + $0x8] sm:$0x1 pattern:$0x75316420] }
  0x61   :  { %1136 = vmatpush1.bf16.msra.mxu1 %v3091_v53  ;;  %v3171_v53 = vld [vmem:[%s4458_s3 + $0xec] ss:$16 sps:$4 sm:$0xff]  }
  0x62   :  { %1137 = vmatprep.subr.bf16.mxu1 %v3099_v54  ;;  %v3196_v54 = vld [vmem:[%s4458_s3 + $0x40] ss:$16 sps:$4 sm:$0xff]  }
  0x63   :  { %1097 = vmatpush2.bf16.msra.mxu0 %v3094_v55  ;;  %v3169_v55 = vld [vmem:[%s4458_s3 + $0xe8] ss:$16 sps:$4 sm:$0xff]  }
  0x64   :  { %1098 = vmatprep.subr.bf16.mxu0 %v3102_v57  ;;  %v3177_v57 = vld [vmem:[%s4458_s3 + $0xcc] ss:$16 sps:$4 sm:$0xff]  }
  0x65   :  { %1138 = vmatpush2.bf16.msra.mxu1 %v3097_v56  ;;  %v268_v56 = vrot.slane %v2571_v52, %v3615_v48 }
  0x66   :  { %1139 = vmatprep.subr.bf16.mxu1 %v3105_v59  ;;  %v3183_v59 = vld [vmem:[%s4458_s3 + $0xac] ss:$16 sps:$4 sm:$0xff]  }
  0x67   :  { %1099 = vmatpush2.bf16.msra.mxu0 %v3100_v58  ;;  %v3175_v58 = vld [vmem:[%s4458_s3 + $0xc8] ss:$16 sps:$4 sm:$0xff]  }
  0x68   :  { %1100 = vmatprep.subr.bf16.mxu0 %v3108_v60 }
  0x69   :  { %1140 = vmatpush2.bf16.msra.mxu1 %v3103_v61 }
  0x6a   :  { %1141 = vmatprep.subr.bf16.mxu1 %v3111_v62 }
  0x6b   :  { %1101 = vmatpush2.bf16.msra.mxu0 %v3106_v0 }
  0x6c   :  { %1102 = vmatprep.subr.bf16.mxu0 %v3114_v1 }
  0x6d   :  { %1142 = vmatpush2.bf16.msra.mxu1 %v3109_v2 }
  0x6e   :  { %1143 = vmatprep.subr.bf16.mxu1 %v3117_v3 }
  0x6f   :  { %1103 = vmatpush2.bf16.msra.mxu0 %v3112_v4 }
  0x70   :  { %1104 = vmatprep.subr.bf16.mxu0 %v3120_v5 }
  0x71   :  { %1144 = vmatpush2.bf16.msra.mxu1 %v3115_v6 }
  0x72   :  { %1145 = vmatprep.subr.bf16.mxu1 %v3123_v7 }
  0x73   :  { %1105 = vmatpush2.bf16.msra.mxu0 %v3118_v8 }
  0x74   :  { %1106 = vmatprep.subr.bf16.mxu0 %v3126_v9 }
  0x75   :  { %1146 = vmatpush2.bf16.msra.mxu1 %v3121_v10 }
  0x76   :  { %1147 = vmatprep.subr.bf16.mxu1 %v3129_v11 }
  0x77   :  { %1107 = vmatpush2.bf16.msra.mxu0 %v3124_v12 }
  0x78   :  { %1108 = vmatprep.subr.bf16.mxu0 %v3132_v13 }
  0x79   :  { %1148 = vmatpush2.bf16.msra.mxu1 %v3127_v14 }
  0x7a   :  { %1149 = vmatprep.subr.bf16.mxu1 %v3135_v15 }
  0x7b   :  { %1109 = vmatpush2.bf16.msra.mxu0 %v3130_v16 }
  0x7c   :  { %1110 = vmatprep.subr.bf16.mxu0 %v3138_v17 }
  0x7d   :  { %1150 = vmatpush2.bf16.msra.mxu1 %v3133_v18 }
  0x7e   :  { %1151 = vmatprep.subr.bf16.mxu1 %v3141_v19 }
  0x7f   :  { %1111 = vmatpush2.bf16.msra.mxu0 %v3136_v20 }
  0x80   :  { %1162 = vmatprep.subr.bf16.mxu0 %v3144_v21 }
  0x81   :  { %1152 = vmatpush2.bf16.msra.mxu1 %v3139_v22 }
  0x82   :  { %1113 = vmatmul.mubr.bf16.vlgmr.msra.gmra.mxu0 %v3648_v63  ;;  %v3166_v63 = vld [vmem:[%s4458_s3 + $0xe0] ss:$16 sps:$4 sm:$0xff]   ;;  %1613 = vmatprep.subr.bf16.mxu1 %v3168_v31 }
  0x83   :  { %1163 = vmatpush1.bf16.msra.mxu0 %v3142_v23  ;;  %1194 = vmatprep.mubr.bf16.mxu0 %v3409_v28 }
  0x84   :  { %1154 = vmatmul.mubr.bf16.vlgmr.msra.gmra.mxu1 %v252_v25  ;;  %1164 = vmatprep.subr.bf16.mxu0 %v3147_v24 }
  0x85   :  { %1614 = vmatpush1.bf16.msra.mxu1 %v3166_v63 }
  0x86   :  { %1615 = vmatprep.subr.bf16.mxu1 %v3174_v33 }
  0x87   :  { %1165 = vmatpush1.bf16.msra.mxu0 %v3145_v26 }
  0x88   :  { %1166 = vmatprep.subr.bf16.mxu0 %v3150_v27 }
  0x89   :  { %1616 = vmatpush1.bf16.msra.mxu1 %v3172_v35 }
  0x8a   :  { %1617 = vmatprep.subr.bf16.mxu1 %v3180_v36 }
  0x8b   :  { %1167 = vmatpush1.bf16.msra.mxu0 %v3148_v29 }
  0x8c   :  { %1168 = vmatprep.subr.bf16.mxu0 %v3153_v30 }
  0x8d   :  { %1618 = vmatpush1.bf16.msra.mxu1 %v3178_v40 }
  0x8e   :  { %1619 = vmatprep.subr.bf16.mxu1 %v3186_v41 }
  0x8f   :  { %1169 = vmatpush1.bf16.msra.mxu0 %v3151_v32 }
  0x90   :  { %1170 = vmatprep.subr.bf16.mxu0 %v3156_v34 }
  0x91   :  { %1620 = vmatpush1.bf16.msra.mxu1 %v3184_v44 }
  0x92   :  { %1621 = vmatprep.subr.bf16.mxu1 %v3192_v45 }
  0x93   :  { %1171 = vmatpush1.bf16.msra.mxu0 %v3154_v37 }
  0x94   :  { %1172 = vmatprep.subr.bf16.mxu0 %v3159_v38 }
  0x95   :  { %1622 = vmatpush1.bf16.msra.mxu1 %v3190_v49 }
  0x96   :  { %1623 = vmatprep.subr.bf16.mxu1 %v3198_v50 }
  0x97   :  { %1173 = vmatpush1.bf16.msra.mxu0 %v3157_v39 }
  0x98   :  { %1174 = vmatprep.subr.bf16.mxu0 %v3162_v43 }
  0x99   :  { %1624 = vmatpush1.bf16.msra.mxu1 %v3196_v54 }
  0x9b   :  { %1175 = vmatpush1.bf16.msra.mxu0 %v3160_v46 }
  0x9c   :  { %1176 = vmatprep.subr.bf16.mxu0 %v3165_v47 }
  0x9f   :  { %1177 = vmatpush1.bf16.msra.mxu0 %v3163_v51 }
  0xa0   :  { %1654 = vmatprep.subr.bf16.mxu0 %v3171_v53 }
  0xa2   :  { %1195 = vmatmul.mubr.bf16.vlgmr.msra.gmra.mxu0 %v268_v56 }
  0xa3   :  { %1655 = vmatpush1.bf16.msra.mxu0 %v3169_v55 }
  0xa4   :  { %1656 = vmatprep.subr.bf16.mxu0 %v3177_v57 }
  0xa5   :  { %18 = vsyncpa [#allocation3], 0  ;;  %v3181_v48 = vld [vmem:[%s4458_s3 + $0xa8] ss:$16 sps:$4 sm:$0xff]   ;;  %v3189_v60 = vld [vmem:[%s4458_s3 + $0x8c] ss:$16 sps:$4 sm:$0xff]  }
  0xa6   :  { %v3187_v61 = vld [vmem:[%s4458_s3 + $0x88] ss:$16 sps:$4 sm:$0xff]   ;;  %v3195_v62 = vld [vmem:[%s4458_s3 + $0x6c] ss:$16 sps:$4 sm:$0xff]   ;;  %v3204_v3 = vld [vmem:[%s4458_s3 + $0x24] ss:$16 sps:$4 sm:$0xff]  }
  0xa7   :  { %1657 = vmatpush1.bf16.msra.mxu0 %v3175_v58  ;;  %v3193_v0 = vld [vmem:[%s4458_s3 + $0x68] ss:$16 sps:$4 sm:$0xff]   ;;  %v3201_v1 = vld [vmem:[%s4458_s3 + $0x4c] ss:$16 sps:$4 sm:$0xff]   ;;  %v3202_v5 = vld [vmem:[%s4458_s3 + $0x20] ss:$16 sps:$4 sm:$0xff]   ;;  %1625 = vmatprep.subr.bf16.mxu1 %v3204_v3 }
  0xa8   :  { %1658 = vmatprep.subr.bf16.mxu0 %v3183_v59  ;;  %v3199_v2 = vld [vmem:[%s4458_s3 + $0x48] ss:$16 sps:$4 sm:$0xff]   ;;  %v3207_v4 = vld [vmem:[%s4458_s3 + $0x2c] ss:$16 sps:$4 sm:$0xff]   ;;  %1626 = vmatpush1.bf16.msra.mxu1 %v3202_v5  ;;  %v3210_v7 = vld [vmem:[%s4458_s3 + $0x4] ss:$16 sps:$4 sm:$0xff]  }
  0xa9   :  { %v3205_v6 = vld [vmem:[%s4458_s3 + $0x28] ss:$16 sps:$4 sm:$0xff]   ;;  %v3213_v8 = vld [vmem:[%s4458_s3 + $0xc] ss:$16 sps:$4 sm:$0xff]   ;;  %v3208_v9 = vld [vmem:[%s4458_s3] ss:$16 sps:$4 sm:$0xff]   ;;  %1627 = vmatprep.subr.bf16.mxu1 %v3210_v7 }
  0xaa   :  { %v3211_v10 = vld [vmem:[%s4458_s3 + $0x8] ss:$16 sps:$4 sm:$0xff]   ;;  %v3216_v11 = vld [vmem:[%s4458_s3 + $0x1e4] ss:$16 sps:$4 sm:$0xff]   ;;  %v3214_v12 = vld [vmem:[%s4458_s3 + $0x1e0] ss:$16 sps:$4 sm:$0xff]  }
  0xab   :  { %1659 = vmatpush1.bf16.msra.mxu0 %v3181_v48  ;;  %v3217_v13 = vld [vmem:[%s4458_s3 + $0x1e8] ss:$16 sps:$4 sm:$0xff]   ;;  %v3219_v14 = vld [vmem:[%s4458_s3 + $0x1ec] ss:$16 sps:$4 sm:$0xff]   ;;  %v3222_v15 = vld [vmem:[%s4458_s3 + $0x1c4] ss:$16 sps:$4 sm:$0xff]  }
  0xac   :  { %1660 = vmatprep.subr.bf16.mxu0 %v3189_v60  ;;  %1628 = vmatpush1.bf16.msra.mxu1 %v3208_v9  ;;  %v3225_v16 = vld [vmem:[%s4458_s3 + $0x1cc] ss:$16 sps:$4 sm:$0xff]   ;;  %v3220_v17 = vld [vmem:[%s4458_s3 + $0x1c0] ss:$16 sps:$4 sm:$0xff]   ;;  %v3223_v18 = vld [vmem:[%s4458_s3 + $0x1c8] ss:$16 sps:$4 sm:$0xff]  }
  0xad   :  { %1629 = vmatprep.subr.bf16.mxu1 %v3216_v11  ;;  %v3228_v19 = vld [vmem:[%s4458_s3 + $0x1a4] ss:$16 sps:$4 sm:$0xff]   ;;  %v3231_v20 = vld [vmem:[%s4458_s3 + $0x1ac] ss:$16 sps:$4 sm:$0xff]   ;;  %v3226_v21 = vld [vmem:[%s4458_s3 + $0x1a0] ss:$16 sps:$4 sm:$0xff]  }
  0xae   :  { %v3229_v22 = vld [vmem:[%s4458_s3 + $0x1a8] ss:$16 sps:$4 sm:$0xff]   ;;  %v3234_v23 = vld [vmem:[%s4458_s3 + $0x184] ss:$16 sps:$4 sm:$0xff]   ;;  %v3237_v24 = vld [vmem:[%s4458_s3 + $0x18c] ss:$16 sps:$4 sm:$0xff]  }
  0xaf   :  { %1661 = vmatpush1.bf16.msra.mxu0 %v3187_v61  ;;  %v3232_v25 = vld [vmem:[%s4458_s3 + $0x180] ss:$16 sps:$4 sm:$0xff]   ;;  %v3235_v26 = vld [vmem:[%s4458_s3 + $0x188] ss:$16 sps:$4 sm:$0xff]   ;;  %v3240_v27 = vld [vmem:[%s4458_s3 + $0x164] ss:$16 sps:$4 sm:$0xff]  }
  0xb0   :  { %1662 = vmatprep.subr.bf16.mxu0 %v3195_v62  ;;  %1630 = vmatpush2.bf16.msra.mxu1 %v3214_v12  ;;  %v3243_v28 = vld [vmem:[%s4458_s3 + $0x16c] ss:$16 sps:$4 sm:$0xff]   ;;  %v3238_v29 = vld [vmem:[%s4458_s3 + $0x160] ss:$16 sps:$4 sm:$0xff]   ;;  %v3241_v30 = vld [vmem:[%s4458_s3 + $0x168] ss:$16 sps:$4 sm:$0xff]  }
  0xb1   :  { %1631 = vmatprep.subr.bf16.mxu1 %v3222_v15  ;;  %v3246_v63 = vld [vmem:[%s4458_s3 + $0x144] ss:$16 sps:$4 sm:$0xff]   ;;  %v3249_v31 = vld [vmem:[%s4458_s3 + $0x14c] ss:$16 sps:$4 sm:$0xff]   ;;  %v3244_v32 = vld [vmem:[%s4458_s3 + $0x140] ss:$16 sps:$4 sm:$0xff]  }
  0xb2   :  { %v3247_v33 = vld [vmem:[%s4458_s3 + $0x148] ss:$16 sps:$4 sm:$0xff]   ;;  %v3252_v34 = vld [vmem:[%s4458_s3 + $0x124] ss:$16 sps:$4 sm:$0xff]   ;;  %v3255_v35 = vld [vmem:[%s4458_s3 + $0x12c] ss:$16 sps:$4 sm:$0xff]  }
  0xb3   :  { %1663 = vmatpush1.bf16.msra.mxu0 %v3193_v0  ;;  %v3250_v36 = vld [vmem:[%s4458_s3 + $0x120] ss:$16 sps:$4 sm:$0xff]   ;;  %v3253_v37 = vld [vmem:[%s4458_s3 + $0x128] ss:$16 sps:$4 sm:$0xff]   ;;  %v3258_v38 = vld [vmem:[%s4458_s3 + $0x104] ss:$16 sps:$4 sm:$0xff]  }
  0xb4   :  { %1664 = vmatprep.subr.bf16.mxu0 %v3201_v1  ;;  %1632 = vmatpush2.bf16.msra.mxu1 %v3220_v17  ;;  %v3261_v39 = vld [vmem:[%s4458_s3 + $0x10c] ss:$16 sps:$4 sm:$0xff]   ;;  %v3256_v40 = vld [vmem:[%s4458_s3 + $0x100] ss:$16 sps:$4 sm:$0xff]   ;;  %v3259_v41 = vld [vmem:[%s4458_s3 + $0x108] ss:$16 sps:$4 sm:$0xff]  }
  0xb5   :  { %1633 = vmatprep.subr.bf16.mxu1 %v3228_v19  ;;  %v3264_v43 = vld [vmem:[%s4460_s5 + $0x74] ss:$8 sps:$4 sm:$0xff]   ;;  %v4137_v45 = vsub.s32 0, %v3600_v42  ;;  %v192_v46 = vld [vmem:[%s4457_s2] sm:$0x3]  ;;  %v4143_v47 = vsub.s32 1, %v3600_v42 }
  0xb6   :  { %v3267_v44 = vld [vmem:[%s4460_s5 + $0x174] ss:$8 sps:$4 sm:$0xff]   ;;  %vm3411_vm0 = vmmov 0   ;;  %vm2512_vm1 = vcmask 523264   ;;  %s3412_s1 = smov [#allocation2]  }
  0xb7   :  { %1665 = vmatpush1.bf16.msra.mxu0 %v3199_v2  ;;  %v197_v49 = vrot.slane %v192_v46, %v4137_v45  ;;  %v201_v50 = vrot.slane %v192_v46, %v4143_v47  ;;  %v3298_v46 = vld [vmem:[%s4460_s5 + $0x10] ss:$8 sps:$4 sm:$0xff]  }
  0xb8   :  { %1666 = vmatprep.subr.bf16.mxu0 %v3207_v4  ;;  %1634 = vmatpush2.bf16.msra.mxu1 %v3226_v21  ;;  %v3265_v21 = vld [vmem:[%s4460_s5 + $0x170] ss:$8 sps:$4 sm:$0xff]  }
  0xb9   :  { %1635 = vmatprep.subr.bf16.mxu1 %v3234_v23  ;;  %v3270_v23 = vld [vmem:[%s4460_s5 + $0x64] ss:$8 sps:$4 sm:$0xff]  }
  0xbb   :  { %1667 = vmatpush1.bf16.msra.mxu0 %v3205_v6 }
  0xbc   :  { %1668 = vmatprep.subr.bf16.mxu0 %v3213_v8  ;;  %1636 = vmatpush2.bf16.msra.mxu1 %v3232_v25  ;;  %v3268_v25 = vld [vmem:[%s4460_s5 + $0x60] ss:$8 sps:$4 sm:$0xff]  }
  0xbd   :  { %1637 = vmatprep.subr.bf16.mxu1 %v3240_v27  ;;  %v3276_v27 = vld [vmem:[%s4460_s5 + $0x54] ss:$8 sps:$4 sm:$0xff]  }
  0xbf   :  { %1669 = vmatpush1.bf16.msra.mxu0 %v3211_v10 }
  0xc0   :  { %1670 = vmatprep.subr.bf16.mxu0 %v3219_v14  ;;  %1638 = vmatpush2.bf16.msra.mxu1 %v3238_v29  ;;  %v3274_v29 = vld [vmem:[%s4460_s5 + $0x50] ss:$8 sps:$4 sm:$0xff]  }
  0xc1   :  { %1639 = vmatprep.subr.bf16.mxu1 %v3246_v63  ;;  %v3282_v63 = vld [vmem:[%s4460_s5 + $0x44] ss:$8 sps:$4 sm:$0xff]  }
  0xc3   :  { %1671 = vmatpush2.bf16.msra.mxu0 %v3217_v13 }
  0xc4   :  { %1672 = vmatprep.subr.bf16.mxu0 %v3225_v16  ;;  %1640 = vmatpush2.bf16.msra.mxu1 %v3244_v32  ;;  %v3280_v32 = vld [vmem:[%s4460_s5 + $0x40] ss:$8 sps:$4 sm:$0xff]  }
  0xc5   :  { %1641 = vmatprep.subr.bf16.mxu1 %v3252_v34  ;;  %v3288_v34 = vld [vmem:[%s4460_s5 + $0x34] ss:$8 sps:$4 sm:$0xff]  }
  0xc7   :  { %1673 = vmatpush2.bf16.msra.mxu0 %v3223_v18 }
  0xc8   :  { %1674 = vmatprep.subr.bf16.mxu0 %v3231_v20  ;;  %1642 = vmatpush2.bf16.msra.mxu1 %v3250_v36  ;;  %v3262_v20 = vld [vmem:[%s4460_s5 + $0x70] ss:$8 sps:$4 sm:$0xff]  }
  0xc9   :  { %1643 = vmatprep.subr.bf16.mxu1 %v3258_v38  ;;  %v3286_v36 = vld [vmem:[%s4460_s5 + $0x30] ss:$8 sps:$4 sm:$0xff]   ;;  %v3294_v38 = vld [vmem:[%s4460_s5 + $0x24] ss:$8 sps:$4 sm:$0xff]  }
  0xcb   :  { %1675 = vmatpush2.bf16.msra.mxu0 %v3229_v22 }
  0xcc   :  { %1676 = vmatprep.subr.bf16.mxu0 %v3237_v24  ;;  %1644 = vmatpush2.bf16.msra.mxu1 %v3256_v40  ;;  %v3273_v24 = vld [vmem:[%s4460_s5 + $0x164] ss:$8 sps:$4 sm:$0xff]   ;;  %v3292_v40 = vld [vmem:[%s4460_s5 + $0x20] ss:$8 sps:$4 sm:$0xff]  }
  0xcd   :  { %2099 = vmatprep.subr.bf16.mxu1 %v3264_v43  ;;  %v3300_v43 = vld [vmem:[%s4460_s5 + $0x14] ss:$8 sps:$4 sm:$0xff]  }
  0xcf   :  { %1677 = vmatpush2.bf16.msra.mxu0 %v3235_v26  ;;  %v3271_v26 = vld [vmem:[%s4460_s5 + $0x160] ss:$8 sps:$4 sm:$0xff]  }
  0xd0   :  { %1678 = vmatprep.subr.bf16.mxu0 %v3243_v28  ;;  %v3279_v28 = vld [vmem:[%s4460_s5 + $0x154] ss:$8 sps:$4 sm:$0xff]  }
  0xd3   :  { %1679 = vmatpush2.bf16.msra.mxu0 %v3241_v30  ;;  %v3277_v30 = vld [vmem:[%s4460_s5 + $0x150] ss:$8 sps:$4 sm:$0xff]  }
  0xd4   :  { %1680 = vmatprep.subr.bf16.mxu0 %v3249_v31  ;;  %v3285_v31 = vld [vmem:[%s4460_s5 + $0x144] ss:$8 sps:$4 sm:$0xff]  }
  0xd7   :  { %1681 = vmatpush2.bf16.msra.mxu0 %v3247_v33  ;;  %v3283_v33 = vld [vmem:[%s4460_s5 + $0x140] ss:$8 sps:$4 sm:$0xff]  }
  0xd8   :  { %1682 = vmatprep.subr.bf16.mxu0 %v3255_v35  ;;  %v3291_v35 = vld [vmem:[%s4460_s5 + $0x134] ss:$8 sps:$4 sm:$0xff]  }
  0xdb   :  { %1683 = vmatpush2.bf16.msra.mxu0 %v3253_v37  ;;  %v3289_v37 = vld [vmem:[%s4460_s5 + $0x130] ss:$8 sps:$4 sm:$0xff]  }
  0xdc   :  { %1684 = vmatprep.subr.bf16.mxu0 %v3261_v39  ;;  %v3297_v39 = vld [vmem:[%s4460_s5 + $0x124] ss:$8 sps:$4 sm:$0xff]  }
  0xdf   :  { %1685 = vmatpush2.bf16.msra.mxu0 %v3259_v41  ;;  %v3295_v41 = vld [vmem:[%s4460_s5 + $0x120] ss:$8 sps:$4 sm:$0xff]  }
  0xe0   :  { %2140 = vmatprep.subr.bf16.mxu0 %v3267_v44  ;;  %v3303_v44 = vld [vmem:[%s4460_s5 + $0x114] ss:$8 sps:$4 sm:$0xff]  }
 0x102   :  { %v1032_v51 = vpop.f32.mrf.mxu0 }
 0x103   :  { %v1033_v52 = vadd.f32 %v1032_v51, %v197_v49  ;;  %v3301_v49 = vld [vmem:[%s4460_s5 + $0x110] ss:$8 sps:$4 sm:$0xff]   ;;  %v3309_v51 = vld [vmem:[%s4460_s5 + $0x104] ss:$8 sps:$4 sm:$0xff]  }
 0x104   :  { %v1034_v53 = vpop.f32.mrf.mxu0  ;;  %v1073_v54 = vpop.f32.mrf.mxu1 }
 0x105   :  { %v1035_v55 = vadd.f32 %v1034_v53, %v201_v50  ;;  %v1074_v56 = vadd.f32 %v1073_v54, %v1033_v52  ;;  %v3306_v50 = vld [vmem:[%s4460_s5 + $0x4] ss:$8 sps:$4 sm:$0xff]   ;;  %v3304_v52 = vld [vmem:[%s4460_s5] ss:$8 sps:$4 sm:$0xff]   ;;  %v3312_v54 = vld [vmem:[%s4460_s5 + $0xf4] ss:$8 sps:$4 sm:$0xff]  }
 0x106   :  { %v1036_v57 = vpop.f32.mrf.mxu0  ;;  %v1075_v58 = vpop.f32.mrf.mxu1  ;;  %v3307_v53 = vld [vmem:[%s4460_s5 + $0x100] ss:$8 sps:$4 sm:$0xff]  }
 0x107   :  { %v1076_v59 = vadd.f32 %v1075_v58, %v1035_v55  ;;  %v3315_v55 = vld [vmem:[%s4460_s5 + $0x1f4] ss:$8 sps:$4 sm:$0xff]   ;;  %v3313_v57 = vld [vmem:[%s4460_s5 + $0x1f0] ss:$8 sps:$4 sm:$0xff]   ;;  %v3318_v58 = vld [vmem:[%s4460_s5 + $0xe4] ss:$8 sps:$4 sm:$0xff]  }
 0x108   :  { %v1037_v48 = vpop.f32.mrf.mxu0  ;;  %v1077_v60 = vpop.f32.mrf.mxu1 }
 0x109   :  { %v3316_v48 = vld [vmem:[%s4460_s5 + $0xe0] ss:$8 sps:$4 sm:$0xff]  }
 0x10a   :  { %v1078_v61 = vpop.f32.mrf.mxu1  ;;  %v3319_v60 = vld [vmem:[%s4460_s5 + $0x1e0] ss:$8 sps:$4 sm:$0xff]  }
 0x10b   :  { %v3324_v61 = vld [vmem:[%s4460_s5 + $0xd4] ss:$8 sps:$4 sm:$0xff]  }
 0x142   :  { %v1114_v62 = vpop.f32.mrf.mxu0 }
 0x143   :  { %v1115_v7 = vadd.f32 %v1114_v62, %v1074_v56  ;;  %v3310_v56 = vld [vmem:[%s4460_s5 + $0xf0] ss:$8 sps:$4 sm:$0xff]   ;;  %v3327_v62 = vld [vmem:[%s4460_s5 + $0x1d4] ss:$8 sps:$4 sm:$0xff]  }
 0x144   :  { %v1116_v0 = vpop.f32.mrf.mxu0  ;;  %v1155_v1 = vpop.f32.mrf.mxu1 }
 0x145   :  { %v1117_v8 = vadd.f32 %v1116_v0, %v1076_v59  ;;  %v1156_v9 = vadd.f32 %v1155_v1, %v1115_v7  ;;  %v3321_v59 = vld [vmem:[%s4460_s5 + $0x1e4] ss:$8 sps:$4 sm:$0xff]   ;;  %v3322_v0 = vld [vmem:[%s4460_s5 + $0xd0] ss:$8 sps:$4 sm:$0xff]   ;;  %v3339_v7 = vld [vmem:[%s4460_s5 + $0x1b4] ss:$8 sps:$4 sm:$0xff]  }
 0x146   :  { %v1118_v2 = vpop.f32.mrf.mxu0  ;;  %v1157_v3 = vpop.f32.mrf.mxu1  ;;  %v3325_v1 = vld [vmem:[%s4460_s5 + $0x1d0] ss:$8 sps:$4 sm:$0xff]  }
 0x147   :  { %v1158_v11 = vadd.f32 %v1157_v3, %v1117_v8  ;;  %v3330_v2 = vld [vmem:[%s4460_s5 + $0xc4] ss:$8 sps:$4 sm:$0xff]   ;;  %v3334_v8 = vld [vmem:[%s4460_s5 + $0xb0] ss:$8 sps:$4 sm:$0xff]  }
 0x148   :  { %v1119_v4 = vpop.f32.mrf.mxu0  ;;  %v1159_v5 = vpop.f32.mrf.mxu1  ;;  %v3333_v3 = vld [vmem:[%s4460_s5 + $0x1c4] ss:$8 sps:$4 sm:$0xff]  }
 0x149   :  { %v3328_v4 = vld [vmem:[%s4460_s5 + $0xc0] ss:$8 sps:$4 sm:$0xff]  }
 0x14a   :  { %v1160_v6 = vpop.f32.mrf.mxu1  ;;  %v3331_v5 = vld [vmem:[%s4460_s5 + $0x1c0] ss:$8 sps:$4 sm:$0xff]  }
 0x14b   :  { %v3336_v6 = vld [vmem:[%s4460_s5 + $0xb4] ss:$8 sps:$4 sm:$0xff]  }
 0x162   :  { %v1196_v10 = vpop.f32.mrf.mxu0 }
 0x163   :  { %v1197_v12 = vadd.f32 %v1196_v10, %v1156_v9  ;;  %v3337_v9 = vld [vmem:[%s4460_s5 + $0x1b0] ss:$8 sps:$4 sm:$0xff]   ;;  %v3342_v10 = vld [vmem:[%s4460_s5 + $0xa4] ss:$8 sps:$4 sm:$0xff]  }
 0x164   :  { %v1198_v13 = vpop.f32.mrf.mxu0 }
 0x165   :  { %v1199_v14 = vadd.f32 %v1198_v13, %v1158_v11  ;;  %v1203_v15 = vmax.f32 %v1197_v12, 0.0  ;;  %v3345_v11 = vld [vmem:[%s4460_s5 + $0x1a4] ss:$8 sps:$4 sm:$0xff]   ;;  %v3340_v12 = vld [vmem:[%s4460_s5 + $0xa0] ss:$8 sps:$4 sm:$0xff]  }
 0x166   :  { %v1200_v16 = vpop.f32.mrf.mxu0  ;;  %v3343_v13 = vld [vmem:[%s4460_s5 + $0x1a0] ss:$8 sps:$4 sm:$0xff]  }
 0x167   :  { %v1204_v17 = vmax.f32 %v1199_v14, 0.0  ;;  %v1205_v22 = vpack.c.bf16 %v1203_v15, %v1203_v15  ;;  %v3348_v14 = vld [vmem:[%s4460_s5 + $0x94] ss:$8 sps:$4 sm:$0xff]   ;;  %v3346_v16 = vld [vmem:[%s4460_s5 + $0x90] ss:$8 sps:$4 sm:$0xff]  }
 0x168   :  { %v1201_v18 = vpop.f32.mrf.mxu0  ;;  %v3351_v15 = vld [vmem:[%s4460_s5 + $0x194] ss:$8 sps:$4 sm:$0xff]  }
 0x169   :  { %v1206_v19 = vpack.c.bf16 %v1204_v17, %v1204_v17  ;;  %v3349_v17 = vld [vmem:[%s4460_s5 + $0x190] ss:$8 sps:$4 sm:$0xff]   ;;  %v3354_v18 = vld [vmem:[%s4460_s5 + $0x84] ss:$8 sps:$4 sm:$0xff]  }
 0x16b   :  { %1645 = vmatprep.mubr.bf16.mxu1 %v1206_v19  ;;  %1686 = vmatprep.mubr.bf16.mxu0 %v1206_v19  ;;  %v3357_v19 = vld [vmem:[%s4460_s5 + $0x184] ss:$8 sps:$4 sm:$0xff]  }
 0x16c   :  { %1646 = vmatmul.mubr.bf16.vlgmr.msra.gmra.mxu1 %v1205_v22  ;;  %1687 = vmatmul.mubr.bf16.vlgmr.msra.gmra.mxu0 %v1205_v22  ;;  %v3358_v22 = vld [vmem:[%s4462_s7 + $0x78] sm:$0xff]  }
 0x16d   :  { %2100 = vmatpush1.bf16.msra.mxu1 %v3262_v20  ;;  %2141 = vmatpush1.bf16.msra.mxu0 %v3265_v21  ;;  %v3352_v20 = vld [vmem:[%s4460_s5 + $0x80] ss:$8 sps:$4 sm:$0xff]  }
 0x16e   :  { %2101 = vmatprep.subr.bf16.mxu1 %v3270_v23  ;;  %2142 = vmatprep.subr.bf16.mxu0 %v3273_v24  ;;  %v3355_v21 = vld [vmem:[%s4460_s5 + $0x180] ss:$8 sps:$4 sm:$0xff]   ;;  %v1283_v23 = vsub.s32 2, %v3600_v42 }
 0x16f   :  { %v1271_v24 = vld [vmem:[%s4459_s4] sm:$0xf] }
 0x171   :  { %2102 = vmatpush1.bf16.msra.mxu1 %v3268_v25  ;;  %2143 = vmatpush1.bf16.msra.mxu0 %v3271_v26  ;;  %v1287_v25 = vsub.s32 3, %v3600_v42  ;;  %v1276_v26 = vrot.slane %v1271_v24, %v4137_v45 }
 0x172   :  { %2103 = vmatprep.subr.bf16.mxu1 %v3276_v27  ;;  %2144 = vmatprep.subr.bf16.mxu0 %v3279_v28  ;;  %v1284_v27 = vrot.slane %v1271_v24, %v1283_v23  ;;  %v1280_v28 = vrot.slane %v1271_v24, %v4143_v47 }
 0x175   :  { %2104 = vmatpush1.bf16.msra.mxu1 %v3274_v29  ;;  %2145 = vmatpush1.bf16.msra.mxu0 %v3277_v30  ;;  %v1288_v29 = vrot.slane %v1271_v24, %v1287_v25 }
 0x176   :  { %2105 = vmatprep.subr.bf16.mxu1 %v3282_v63  ;;  %2146 = vmatprep.subr.bf16.mxu0 %v3285_v31 }
 0x179   :  { %2106 = vmatpush1.bf16.msra.mxu1 %v3280_v32  ;;  %2147 = vmatpush1.bf16.msra.mxu0 %v3283_v33 }
 0x17a   :  { %2107 = vmatprep.subr.bf16.mxu1 %v3288_v34  ;;  %2148 = vmatprep.subr.bf16.mxu0 %v3291_v35 }
 0x17d   :  { %2108 = vmatpush1.bf16.msra.mxu1 %v3286_v36  ;;  %2149 = vmatpush1.bf16.msra.mxu0 %v3289_v37 }
 0x17e   :  { %2109 = vmatprep.subr.bf16.mxu1 %v3294_v38  ;;  %2150 = vmatprep.subr.bf16.mxu0 %v3297_v39 }
 0x181   :  { %2110 = vmatpush1.bf16.msra.mxu1 %v3292_v40  ;;  %2151 = vmatpush1.bf16.msra.mxu0 %v3295_v41 }
 0x182   :  { %2111 = vmatprep.subr.bf16.mxu1 %v3300_v43  ;;  %2152 = vmatprep.subr.bf16.mxu0 %v3303_v44 }
 0x185   :  { %2112 = vmatpush1.bf16.msra.mxu1 %v3298_v46  ;;  %2153 = vmatpush1.bf16.msra.mxu0 %v3301_v49 }
 0x186   :  { %2113 = vmatprep.subr.bf16.mxu1 %v3306_v50  ;;  %2154 = vmatprep.subr.bf16.mxu0 %v3309_v51  ;;  %v3359_v50 = vld [vmem:[%s4462_s7 + $0x38] sm:$0xff]  }
 0x189   :  { %2114 = vmatpush1.bf16.msra.mxu1 %v3304_v52  ;;  %2155 = vmatpush1.bf16.msra.mxu0 %v3307_v53  ;;  %v3360_v53 = vld [vmem:[%s4462_s7 + $0x70] sm:$0xff]  }
 0x18a   :  { %2115 = vmatprep.subr.bf16.mxu1 %v3312_v54  ;;  %2156 = vmatprep.subr.bf16.mxu0 %v3315_v55  ;;  %v3361_v54 = vld [vmem:[%s4462_s7 + $0x30] sm:$0xff]   ;;  %v3362_v55 = vld [vmem:[%s4462_s7 + $0x68] sm:$0xff]  }
 0x18d   :  { %2116 = vmatpush2.bf16.msra.mxu1 %v3310_v56  ;;  %2157 = vmatpush2.bf16.msra.mxu0 %v3313_v57  ;;  %v3363_v56 = vld [vmem:[%s4462_s7 + $0x28] sm:$0xff]   ;;  %v3364_v57 = vld [vmem:[%s4462_s7 + $0x60] sm:$0xff]  }
 0x18e   :  { %2117 = vmatprep.subr.bf16.mxu1 %v3318_v58  ;;  %2158 = vmatprep.subr.bf16.mxu0 %v3321_v59  ;;  %v3365_v58 = vld [vmem:[%s4462_s7 + $0x20] sm:$0xff]   ;;  %v3366_v59 = vld [vmem:[%s4462_s7 + $0x58] sm:$0xff]  }
 0x191   :  { %2118 = vmatpush2.bf16.msra.mxu1 %v3316_v48  ;;  %2159 = vmatpush2.bf16.msra.mxu0 %v3319_v60  ;;  %v3367_v48 = vld [vmem:[%s4462_s7 + $0x18] sm:$0xff]   ;;  %v3368_v60 = vld [vmem:[%s4462_s7 + $0x50] sm:$0xff]  }
 0x192   :  { %2119 = vmatprep.subr.bf16.mxu1 %v3324_v61  ;;  %2160 = vmatprep.subr.bf16.mxu0 %v3327_v62  ;;  %v3369_v61 = vld [vmem:[%s4462_s7 + $0x10] sm:$0xff]   ;;  %v3370_v62 = vld [vmem:[%s4462_s7 + $0x48] sm:$0xff]  }
 0x195   :  { %2120 = vmatpush2.bf16.msra.mxu1 %v3322_v0  ;;  %2161 = vmatpush2.bf16.msra.mxu0 %v3325_v1  ;;  %v3371_v0 = vld [vmem:[%s4462_s7 + $0x8] sm:$0xff]   ;;  %v3372_v1 = vld [vmem:[%s4462_s7 + $0x40] sm:$0xff]  }
 0x196   :  { %2121 = vmatprep.subr.bf16.mxu1 %v3330_v2  ;;  %2162 = vmatprep.subr.bf16.mxu0 %v3333_v3  ;;  %v3373_v2 = vld [vmem:[%s4462_s7] sm:$0xff]   ;;  %v3374_v3 = vld [vmem:[%s4464_s9 + $0x38] sm:$0xff]  }
 0x199   :  { %2122 = vmatpush2.bf16.msra.mxu1 %v3328_v4  ;;  %2163 = vmatpush2.bf16.msra.mxu0 %v3331_v5  ;;  %v3410_v4 = vmov 0.0   ;;  %v3375_v5 = vld [vmem:[%s4464_s9 + $0x30] sm:$0xff]  }
 0x19a   :  { %2123 = vmatprep.subr.bf16.mxu1 %v3336_v6  ;;  %2164 = vmatprep.subr.bf16.mxu0 %v3339_v7  ;;  %v3376_v6 = vld [vmem:[%s4464_s9 + $0x28] sm:$0xff]   ;;  %v3377_v7 = vld [vmem:[%s4464_s9 + $0x20] sm:$0xff]  }
 0x19d   :  { %2124 = vmatpush2.bf16.msra.mxu1 %v3334_v8  ;;  %2165 = vmatpush2.bf16.msra.mxu0 %v3337_v9  ;;  %v3378_v8 = vld [vmem:[%s4464_s9 + $0x18] sm:$0xff]   ;;  %v1767_v9 = vld [vmem:[%s4461_s6] sm:$0x3] }
 0x19e   :  { %2125 = vmatprep.subr.bf16.mxu1 %v3342_v10  ;;  %2166 = vmatprep.subr.bf16.mxu0 %v3345_v11  ;;  %v1772_v10 = vrot.slane %v1767_v9, %v4137_v45  ;;  %v1776_v11 = vrot.slane %v1767_v9, %v4143_v47  ;;  %v3379_v45 = vld [vmem:[%s4464_s9 + $0x10] sm:$0xff]   ;;  %v3380_v47 = vld [vmem:[%s4464_s9 + $0x8] sm:$0xff]  }
 0x1a1   :  { %2126 = vmatpush2.bf16.msra.mxu1 %v3340_v12  ;;  %2167 = vmatpush2.bf16.msra.mxu0 %v3343_v13 }
 0x1a2   :  { %2127 = vmatprep.subr.bf16.mxu1 %v3348_v14  ;;  %2168 = vmatprep.subr.bf16.mxu0 %v3351_v15 }
 0x1a5   :  { %2128 = vmatpush2.bf16.msra.mxu1 %v3346_v16  ;;  %2169 = vmatpush2.bf16.msra.mxu0 %v3349_v17 }
 0x1a6   :  { %2129 = vmatprep.subr.bf16.mxu1 %v3354_v18  ;;  %2170 = vmatprep.subr.bf16.mxu0 %v3357_v19 }
 0x1a9   :  { %2130 = vmatpush2.bf16.msra.mxu1 %v3352_v20  ;;  %2171 = vmatpush2.bf16.msra.mxu0 %v3355_v21 }
 0x1aa   :  { %2876 = vmatprep.subr.bf16.mxu1 %v3358_v22  ;;  %2912 = vmatprep.subr.bf16.mxu0 %v3410_v4 }
 0x22c   :  { %v1647_v30 = vpop.f32.mrf.mxu1  ;;  %v1688_v63 = vpop.f32.mrf.mxu0 }
 0x22d   :  { %v1648_v31 = vadd.f32 %v1647_v30, %v1276_v26  ;;  %v1689_v32 = vadd.f32 %v1688_v63, %v1284_v27  ;;  %v3381_v26 = vld [vmem:[%s4464_s9] sm:$0xff]   ;;  %v3382_v27 = vld [vmem:[%s4466_s11 + $0x18] sm:$0xff]  }
 0x22e   :  { %v1649_v33 = vpop.f32.mrf.mxu1  ;;  %v1690_v34 = vpop.f32.mrf.mxu0  ;;  %v2844_v30 = vld [vmem:[%s4463_s8] ss:$0 sm:$0xff] }
 0x22f   :  { %v1650_v35 = vadd.f32 %v1649_v33, %v1280_v28  ;;  %v1691_v36 = vadd.f32 %v1690_v34, %v1288_v29  ;;  %v1695_v37 = vmax.f32 %v1648_v31, 0.0  ;;  %v1697_v38 = vmax.f32 %v1689_v32, 0.0  ;;  %v3383_v28 = vld [vmem:[%s4466_s11 + $0x10] sm:$0xff]  }
 0x230   :  { %v1651_v39 = vpop.f32.mrf.mxu1  ;;  %v1692_v40 = vpop.f32.mrf.mxu0 }
 0x231   :  { %v1696_v41 = vmax.f32 %v1650_v35, 0.0  ;;  %v1698_v42 = vmax.f32 %v1691_v36, 0.0  ;;  %v1699_v51 = vpack.c.bf16 %v1695_v37, %v1695_v37  ;;  %v1701_v52 = vpack.c.bf16 %v1697_v38, %v1697_v38  ;;  %v3384_v37 = vld [vmem:[%s4466_s11 + $0x8] sm:$0xff]   ;;  %v3385_v38 = vld [vmem:[%s4466_s11] sm:$0xff]   ;;  %s2563_s11 = sshll.u32 %s3412_s1, 4  ;;  %s2564_s11 = int_to_ptr.vmem [resolvable:$true] %s2563_s11 }
 0x232   :  { %v1652_v43 = vpop.f32.mrf.mxu1  ;;  %v1693_v44 = vpop.f32.mrf.mxu0  ;;  %v2861_v39 = vld [vmem:[%s4465_s10] ss:$0 sm:$0xff]  ;;  %s3386_s10 = scalar_lea.vmem %s2564_s11, 32  ;;  %p3391_p1 = scmp.lt.s32.totalorder %s2564_s11, %s2564_s11 }
 0x233   :  { %v1700_v46 = vpack.c.bf16 %v1696_v41, %v1696_v41  ;;  %v1702_v49 = vpack.c.bf16 %v1698_v42, %v1698_v42  ;;  %p3387_p0 = scmp.ne.s32.totalorder %s2564_s11, %s3386_s10  ;;  %p3392_p2 = scmp.lt.s32.totalorder %s3386_s10, %s3386_s10 }
 0x235   :  { %2131 = vmatprep.mubr.bf16.mxu1 %v1700_v46  ;;  %2172 = vmatprep.mubr.bf16.mxu0 %v1702_v49  ;;  %p3393_p3 = por %p3392_p2, %p3391_p1 }
 0x236   :  { %2132 = vmatmul.mubr.bf16.vlgmr.msra.gmra.mxu1 %v1699_v51  ;;  %2173 = vmatmul.mubr.bf16.vlgmr.msra.gmra.mxu0 %v1701_v52 }
 0x237   :  { %2877 = vmatpush3.bf16.msra.mxu1 %v3359_v50  ;;  %2913 = vmatpush3.bf16.msra.mxu0 %v3374_v3  ;;  %v2870_v50 = vld [vmem:[%s4467_s12] ss:$0 sm:$0xff]  ;;  %p3394_p4 = pnand %p3393_p3, %p3387_p0 }
 0x238   :  { %2878 = vmatprep.subr.bf16.mxu1 %v3360_v53  ;;  %2914 = vmatprep.subr.bf16.mxu0 %v3410_v4 }
 0x239   :  { %2928 = vmatprep.mubr.msk.bf16.mxu0 %vm3411_vm0, %v3410_v4 }
 0x23b   :  { %2879 = vmatpush3.bf16.msra.mxu1 %v3361_v54  ;;  %2915 = vmatpush3.bf16.msra.mxu0 %v3375_v5 }
 0x23c   :  { %2880 = vmatprep.subr.bf16.mxu1 %v3362_v55  ;;  %2916 = vmatprep.subr.bf16.mxu0 %v3410_v4 }
 0x23f   :  { %2881 = vmatpush3.bf16.msra.mxu1 %v3363_v56  ;;  %2917 = vmatpush3.bf16.msra.mxu0 %v3376_v6 }
 0x240   :  { %2882 = vmatprep.subr.bf16.mxu1 %v3364_v57  ;;  %2918 = vmatprep.subr.bf16.mxu0 %v3410_v4 }
 0x243   :  { %2883 = vmatpush3.bf16.msra.mxu1 %v3365_v58  ;;  %2919 = vmatpush3.bf16.msra.mxu0 %v3377_v7 }
 0x244   :  { %2884 = vmatprep.subr.bf16.mxu1 %v3366_v59  ;;  %2920 = vmatprep.subr.bf16.mxu0 %v3410_v4 }
 0x247   :  { %2885 = vmatpush3.bf16.msra.mxu1 %v3367_v48  ;;  %2921 = vmatpush3.bf16.msra.mxu0 %v3378_v8 }
 0x248   :  { %2886 = vmatprep.subr.bf16.mxu1 %v3368_v60  ;;  %2922 = vmatprep.subr.bf16.mxu0 %v3410_v4 }
 0x24b   :  { %2887 = vmatpush3.bf16.msra.mxu1 %v3369_v61  ;;  %2923 = vmatpush3.bf16.msra.mxu0 %v3379_v45 }
 0x24c   :  { %2888 = vmatprep.subr.bf16.mxu1 %v3370_v62  ;;  %2924 = vmatprep.subr.bf16.mxu0 %v3410_v4 }
 0x24f   :  { %2889 = vmatpush3.bf16.msra.mxu1 %v3371_v0  ;;  %2925 = vmatpush3.bf16.msra.mxu0 %v3380_v47 }
 0x250   :  { %2890 = vmatprep.subr.bf16.mxu1 %v3372_v1  ;;  %2926 = vmatprep.subr.bf16.mxu0 %v3410_v4 }
 0x253   :  { %2891 = vmatpush3.bf16.msra.mxu1 %v3373_v2  ;;  %2927 = vmatpush3.bf16.msra.mxu0 %v3381_v26 }
 0x254   :  { %2932 = vmatprep.subr.bf16.mxu1 %v3410_v4 }
 0x2f6   :  { %v2133_v12 = vpop.f32.mrf.mxu1  ;;  %v2174_v13 = vpop.f32.mrf.mxu0 }
 0x2f7   :  { %v2134_v14 = vadd.f32 %v2133_v12, %v1772_v10 }
 0x2f8   :  { %v2135_v15 = vpop.f32.mrf.mxu1  ;;  %v2176_v16 = vpop.f32.mrf.mxu0 }
 0x2f9   :  { %v2136_v17 = vadd.f32 %v2135_v15, %v1776_v11  ;;  %v2175_v18 = vadd.f32 %v2174_v13, %v2134_v14 }
 0x2fa   :  { %v2137_v19 = vpop.f32.mrf.mxu1  ;;  %v2178_v20 = vpop.f32.mrf.mxu0 }
 0x2fb   :  { %v2177_v21 = vadd.f32 %v2176_v16, %v2136_v17  ;;  %v2181_v25 = vpack.c.bf16 %v2175_v18, %v2175_v18 }
 0x2fc   :  { %v2138_v22 = vpop.f32.mrf.mxu1  ;;  %v2179_v23 = vpop.f32.mrf.mxu0 }
 0x2fd   :  { %v2182_v24 = vpack.c.bf16 %v2177_v21, %v2177_v21 }
 0x2ff   :  { %2350 = vmatprep.mubr.bf16.mxu1 %v2182_v24 }
 0x300   :  { %2351 = vmatmul.mubr.bf16.vlgmr.msra.gmra.mxu1 %v2181_v25 }
 0x301   :  { %2940 = vmatprep.mubr.msk.bf16.mxu1 %vm3411_vm0, %v3410_v4  ;;  %2933 = vmatpush3.bf16.msra.mxu1 %v3382_v27 }
 0x302   :  { %2934 = vmatprep.subr.bf16.mxu1 %v3410_v4 }
 0x305   :  { %2935 = vmatpush3.bf16.msra.mxu1 %v3383_v28 }
 0x306   :  { %2936 = vmatprep.subr.bf16.mxu1 %v3410_v4 }
 0x309   :  { %2937 = vmatpush3.bf16.msra.mxu1 %v3384_v37 }
 0x30a   :  { %2938 = vmatprep.subr.bf16.mxu1 %v3410_v4 }
 0x30d   :  { %2939 = vmatpush3.bf16.msra.mxu1 %v3385_v38 }
 0x3c0   :  { %v2892_v29 = vpop.f32.mrf.mxu1 }
 0x3c2   :  { %v2893_v63 = vpop.f32.mrf.mxu1 }
 0x3c3   :  { %v2894_v31 = vadd.f32 %v2893_v63, %v2892_v29 }
 0x3c4   :  { %v2895_v32 = vpop.f32.mrf.mxu1 }
 0x3c5   :  { %v2353_v33 = vadd.f32 %v2894_v31, %v2844_v30 }
 0x3c6   :  { %v2896_v34 = vpop.f32.mrf.mxu1 }
 0x3c7   :  { %v2358_v35 = vmax.f32 %v2353_v33, 0.0 }
 0x3c9   :  { %v2359_v36 = vpack.c.bf16 %v2358_v35, %v2358_v35 }
 0x3cb   :  { %2929 = vmatmul.mubr.bf16.vlgmr.msra.gmra.mxu0 %v2359_v36 }
 0x48b   :  { %v2465_v40 = vpop.f32.mrf.mxu0 }
 0x48c   :  { %v2466_v41 = vadd.f32 %v2861_v39, %v2465_v40 }
 0x48d   :  { %v2930_v42 = vpop.f32.mrf.mxu0 }
 0x48e   :  { %v2471_v43 = vmax.f32 %v2466_v41, 0.0 }
 0x48f   :  { %v2468_v44 = vpop.f32.mrf.mxu0 }
 0x490   :  { %v2472_v46 = vpack.c.bf16 %v2471_v43, %v2471_v43 }
 0x491   :  { %v2931_v49 = vpop.f32.mrf.mxu0 }
 0x492   :  { %2941 = vmatmul.mubr.msk.bf16.vlgmr.msra.gmra.mxu1 %vm2512_vm1, %v2472_v46 }
 0x552   :  { %v2550_v51 = vpop.f32.mrf.mxu1 }
 0x553   :  { %v2551_v52 = vadd.f32 %v2870_v50, %v2550_v51 }
 0x554   :  { %v2942_v53 = vpop.f32.mrf.mxu1 }
 0x555   :  { %2556 = vst [vmem:[#allocation2] sm:$0x3] %v2551_v52 }
 0x556   :  { %v2553_v54 = vpop.f32.mrf.mxu1 }
 0x557   :  { %3397 = shalt.err (!%p3394_p4)
}
 0x558   :  { %2566 = dma.vmem_to_hbm [thread:$0]  %s2564_s11, 32, %s4468_s13, [#allocation3]   ;;  %v2943_v55 = vpop.f32.mrf.mxu1 }
 0x559   :  { %3406 = dma.done.wait [#allocation3], 32  }
 0x55a   :  { %3407 = vsyncadd [#allocation3], 4294967264 }
 0x55b   :  { %2570 = vsyncpa [#allocation3], 1 }

</bundles_post_ra>
